<compile_context>
chip_gen: v7x
topology: tpu7x:2x2x1
jax: 0.10.0
libtpu: 0.0.40
codegen_flags: <defaults>
</compile_context>

<pallas_src>
import jax
import jax.numpy as jnp
from jax import lax
from jax.experimental import pallas as pl
from jax.experimental.pallas import tpu as pltpu


_SUBLANE = 8  # f32 sublane granularity


def _round_up(n, m):
    return ((n + m - 1) // m) * m


def _ln(x, g, b, eps):
    m = jnp.mean(x, axis=-1, keepdims=True)
    v = jnp.mean(jnp.square(x - m), axis=-1, keepdims=True)
    return (x - m) * lax.rsqrt(v + eps) * g + b


# ----------------------------------------------------------------------------
# Single fused kernel: embedding -> input LN -> LSTM stack -> Linear -> out LN
# ----------------------------------------------------------------------------
def _make_predictor_kernel(T, Bp, H, num_layers, eps):
    TB = T * Bp

    def kernel(*refs):
        n_in = 4 + 5 * num_layers + 4
        tok_ref, table_ref, in_g_ref, in_b_ref = refs[0:4]
        layer_refs = refs[4:4 + 5 * num_layers]
        lin_w_ref, lin_b_ref, out_g_ref, out_b_ref = refs[4 + 5 * num_layers:n_in]
        out_ref, hT_ref, cT_ref = refs[n_in:n_in + 3]
        gx_sc, seq_sc = refs[n_in + 3:n_in + 5]

        V = table_ref.shape[0]

        # --- fused embedding gather (one-hot matmul on the MXU) + input LN ---
        # TODO(synk): for large vocabularies replace the one-hot matmul with a
        # scalar-prefetched pl.Element row-gather BlockSpec.
        tok = tok_ref[...]                                          # (TB, 1) i32
        one_hot = (lax.broadcasted_iota(jnp.int32, (TB, V), 1) == tok)
        emb = jnp.dot(one_hot.astype(jnp.float32), table_ref[...],
                      preferred_element_type=jnp.float32)           # (TB, D)
        x = _ln(emb, in_g_ref[...], in_b_ref[...], eps)             # (TB, D)

        # --- stacked LSTM layers ---------------------------------------------
        for l in range(num_layers):
            wx_ref, bx_ref, wp_ref, h0_ref, c0_ref = layer_refs[5 * l:5 * (l + 1)]
            # Hoisted input projection: one big (TB, Din) x (Din, 4H) matmul for
            # the whole sequence instead of T tiny matmuls inside the recurrence.
            gx_sc[...] = (jnp.dot(x, wx_ref[...],
                                  preferred_element_type=jnp.float32)
                          + bx_ref[...])                            # (TB, 4H)
            wp = wp_ref[...]
            h = h0_ref[...].astype(jnp.float32)
            c = c0_ref[...].astype(jnp.float32)
            # T is small at these shapes: fully unroll the recurrence so the
            # scheduler sees the whole dependence chain.
            # TODO(synk): for long T switch to lax.fori_loop with pl.ds slices.
            for t in range(T):
                g = gx_sc[t * Bp:(t + 1) * Bp, :] + jnp.dot(
                    h, wp, preferred_element_type=jnp.float32)      # (Bp, 4H)
                i_g = jax.nn.sigmoid(g[:, 0:H])
                f_g = jax.nn.sigmoid(g[:, H:2 * H])
                c_g = jnp.tanh(g[:, 2 * H:3 * H])
                o_g = jax.nn.sigmoid(g[:, 3 * H:4 * H])
                c = f_g * c + i_g * c_g
                h = o_g * jnp.tanh(c)
                seq_sc[t * Bp:(t + 1) * Bp, :] = h
            # Final state written once per layer (not per timestep).
            hT_ref[l] = h.astype(hT_ref.dtype)
            cT_ref[l] = c.astype(cT_ref.dtype)
            x = seq_sc[...]                                         # (TB, H)

        # --- final Linear + output LayerNorm ----------------------------------
        y = jnp.dot(x, lin_w_ref[...],
                    preferred_element_type=jnp.float32) + lin_b_ref[...]
        out_ref[...] = _ln(y, out_g_ref[...], out_b_ref[...], eps).astype(out_ref.dtype)

    return kernel


# ----------------------------------------------------------------------------
# Parameter construction (deterministic, in-script).
# ----------------------------------------------------------------------------
def init_predictor_params(key, num_symbols, output_dim, symbol_embedding_dim,
                          num_lstm_layers, lstm_hidden_dim):
    keys = jax.random.split(key, 8 + 3 * num_lstm_layers)
    ki = iter(keys)
    params = {
        "embedding": jax.random.normal(next(ki), (num_symbols, symbol_embedding_dim),
                                       jnp.float32) * 0.1,
        "in_ln_g": 1.0 + 0.05 * jax.random.normal(next(ki), (symbol_embedding_dim,),
                                                  jnp.float32),
        "in_ln_b": 0.05 * jax.random.normal(next(ki), (symbol_embedding_dim,),
                                            jnp.float32),
        "lstm": [],
        "lin_w": jax.random.normal(next(ki), (lstm_hidden_dim, output_dim),
                                   jnp.float32) * 0.1,
        "lin_b": 0.05 * jax.random.normal(next(ki), (output_dim,), jnp.float32),
        "out_ln_g": 1.0 + 0.05 * jax.random.normal(next(ki), (output_dim,), jnp.float32),
        "out_ln_b": 0.05 * jax.random.normal(next(ki), (output_dim,), jnp.float32),
    }
    for idx in range(num_lstm_layers):
        in_dim = symbol_embedding_dim if idx == 0 else lstm_hidden_dim
        params["lstm"].append({
            # stored pre-transposed: x @ wx, h @ wp
            "wx": jax.random.normal(next(ki), (in_dim, 4 * lstm_hidden_dim),
                                    jnp.float32) * 0.1,
            "bx": 0.05 * jax.random.normal(next(ki), (4 * lstm_hidden_dim,), jnp.float32),
            "wp": jax.random.normal(next(ki), (lstm_hidden_dim, 4 * lstm_hidden_dim),
                                    jnp.float32) * 0.1,
        })
    return params


# ----------------------------------------------------------------------------
# Full forward pass (mirrors Predictor.forward), one fused pallas_call.
# ----------------------------------------------------------------------------
def predictor_forward(params, tokens, lengths, state=None, eps=1e-5):
    B, U = tokens.shape
    T = U
    table = params["embedding"]
    V, D = table.shape
    L = len(params["lstm"])
    H = params["lstm"][0]["wp"].shape[0]
    O = params["lin_w"].shape[1]

    Bp = _round_up(B, _SUBLANE)        # pad batch to sublane granularity
    TB = T * Bp

    # time-major, batch padded, flattened: row t*Bp + b == (time t, batch b)
    tok_pad = jnp.zeros((Bp, U), jnp.int32).at[:B].set(tokens.astype(jnp.int32))
    tok_flat = tok_pad.T.reshape(TB, 1)

    def pad_rows(a):
        return jnp.zeros((Bp, a.shape[1]), jnp.float32).at[:B].set(
            a.astype(jnp.float32))

    args = [tok_flat, table,
            params["in_ln_g"].reshape(1, D), params["in_ln_b"].reshape(1, D)]
    for l, lp in enumerate(params["lstm"]):
        if state is None:
            h0 = jnp.zeros((Bp, H), jnp.float32)
            c0 = jnp.zeros((Bp, H), jnp.float32)
        else:
            h0 = pad_rows(state[l][0])
            c0 = pad_rows(state[l][1])
        args += [lp["wx"], lp["bx"].reshape(1, 4 * H), lp["wp"], h0, c0]
    args += [params["lin_w"], params["lin_b"].reshape(1, O),
             params["out_ln_g"].reshape(1, O), params["out_ln_b"].reshape(1, O)]

    out_flat, hT, cT = pl.pallas_call(
        _make_predictor_kernel(T, Bp, H, L, eps),
        out_shape=(
            jax.ShapeDtypeStruct((TB, O), jnp.float32),
            jax.ShapeDtypeStruct((L, Bp, H), jnp.float32),
            jax.ShapeDtypeStruct((L, Bp, H), jnp.float32),
        ),
        scratch_shapes=[
            pltpu.VMEM((TB, 4 * H), jnp.float32),   # hoisted gate projections
            pltpu.VMEM((TB, H), jnp.float32),       # per-layer output sequence
        ],
    )(*args)

    out = out_flat.reshape(T, Bp, O)[:, :B, :].transpose(1, 0, 2)   # (B, U, O)
    state_out = [[hT[l, :B], cT[l, :B]] for l in range(L)]
    return out, lengths, state_out


# ----------------------------------------------------------------------------
# Pure-JAX reference (for correctness check only).
# ----------------------------------------------------------------------------
def _ln_ref(x, g, b, eps=1e-5):
    m = jnp.mean(x, axis=-1, keepdims=True)
    v = jnp.mean(jnp.square(x - m), axis=-1, keepdims=True)
    return (x - m) * lax.rsqrt(v + eps) * g + b


def predictor_forward_ref(params, tokens, lengths, state=None):
    B, U = tokens.shape
    emb = params["embedding"][tokens.T]
    x = _ln_ref(emb, params["in_ln_g"], params["in_ln_b"])
    state_out = []
    for layer_idx, lp in enumerate(params["lstm"]):
        H = lp["wp"].shape[0]
        h = jnp.zeros((B, H), x.dtype)
        c = jnp.zeros((B, H), x.dtype)
        gated = jnp.einsum("tbd,dg->tbg", x, lp["wx"]) + lp["bx"]
        outs = []
        for t in range(U):
            gates = gated[t] + h @ lp["wp"]
            i, f, g, o = jnp.split(gates, 4, axis=1)
            c = jax.nn.sigmoid(f) * c + jax.nn.sigmoid(i) * jnp.tanh(g)
            h = jax.nn.sigmoid(o) * jnp.tanh(c)
            outs.append(h)
        x = jnp.stack(outs, axis=0)
        state_out.append([h, c])
    y = jnp.einsum("tbh,ho->tbo", x, params["lin_w"]) + params["lin_b"]
    y = _ln_ref(y, params["out_ln_g"], params["out_ln_b"])
    return y.transpose(1, 0, 2), lengths, state_out


# ----------------------------------------------------------------------------
if __name__ == "__main__":
    num_symbols = 16
    output_dim = 32
    symbol_embedding_dim = 32
    num_lstm_layers = 2
    lstm_hidden_dim = 32
    B, U = 2, 8

    key = jax.random.PRNGKey(0)
    kp, kt, kl = jax.random.split(key, 3)
    params = init_predictor_params(kp, num_symbols, output_dim,
                                   symbol_embedding_dim, num_lstm_layers,
                                   lstm_hidden_dim)
    tokens = jax.random.randint(kt, (B, U), 0, num_symbols, dtype=jnp.int32)
    lengths = jnp.array([U, U - 2], dtype=jnp.int32)

    out, out_lengths, state_out = predictor_forward(params, tokens, lengths)
    out = jax.block_until_ready(out)

    ref_out, _, ref_state = predictor_forward_ref(params, tokens, lengths)
    assert out.shape == (B, U, output_dim)
    assert jnp.allclose(out, ref_out, atol=1e-4, rtol=1e-4)
    for (h, c), (hr, cr) in zip(state_out, ref_state):
        assert jnp.allclose(h, hr, atol=1e-4, rtol=1e-4)
        assert jnp.allclose(c, cr, atol=1e-4, rtol=1e-4)

    print("KERNEL_OK")
</pallas_src>

<mosaic_0001>
module attributes {stable_mosaic.version = 11 : i64} {
  func.func @kernel(%arg0: memref<64x1xi32, #tpu.memory_space<vmem>>, %arg1: memref<16x32xf32, #tpu.memory_space<vmem>>, %arg2: memref<1x32xf32, #tpu.memory_space<vmem>>, %arg3: memref<1x32xf32, #tpu.memory_space<vmem>>, %arg4: memref<32x128xf32, #tpu.memory_space<vmem>>, %arg5: memref<1x128xf32, #tpu.memory_space<vmem>>, %arg6: memref<32x128xf32, #tpu.memory_space<vmem>>, %arg7: memref<8x32xf32, #tpu.memory_space<vmem>>, %arg8: memref<8x32xf32, #tpu.memory_space<vmem>>, %arg9: memref<32x128xf32, #tpu.memory_space<vmem>>, %arg10: memref<1x128xf32, #tpu.memory_space<vmem>>, %arg11: memref<32x128xf32, #tpu.memory_space<vmem>>, %arg12: memref<8x32xf32, #tpu.memory_space<vmem>>, %arg13: memref<8x32xf32, #tpu.memory_space<vmem>>, %arg14: memref<32x32xf32, #tpu.memory_space<vmem>>, %arg15: memref<1x32xf32, #tpu.memory_space<vmem>>, %arg16: memref<1x32xf32, #tpu.memory_space<vmem>>, %arg17: memref<1x32xf32, #tpu.memory_space<vmem>>, %arg18: memref<64x32xf32, #tpu.memory_space<vmem>>, %arg19: memref<2x8x32xf32, #tpu.memory_space<vmem>>, %arg20: memref<2x8x32xf32, #tpu.memory_space<vmem>>, %arg21: memref<64x128xf32, #tpu.memory_space<vmem>>, %arg22: memref<64x32xf32, #tpu.memory_space<vmem>>) attributes {dimension_semantics = [], scalar_prefetch = 0 : i64, scratch_operands = 2 : i64, tpu.core_type = #tpu.core_type<tc>} {
    %c0 = arith.constant 0 : index
    %c0_0 = arith.constant 0 : index
    %0 = vector.load %arg0[%c0, %c0_0] : memref<64x1xi32, #tpu.memory_space<vmem>>, vector<64x1xi32>
    %1 = tpu.iota {dimensions = array<i32: 1>} : vector<64x16xi32>
    %2 = vector.broadcast %0 : vector<64x1xi32> to vector<64x16xi32>
    %3 = arith.cmpi eq, %1, %2 : vector<64x16xi32>
    %4 = arith.extui %3 : vector<64x16xi1> to vector<64x16xi32>
    %5 = arith.sitofp %4 : vector<64x16xi32> to vector<64x16xf32>
    %c0_1 = arith.constant 0 : index
    %c0_2 = arith.constant 0 : index
    %6 = vector.load %arg1[%c0_1, %c0_2] : memref<16x32xf32, #tpu.memory_space<vmem>>, vector<16x32xf32>
    %cst = arith.constant dense<0.000000e+00> : vector<64x32xf32>
    %7 = tpu.matmul %5, %6, %cst {dimension_numbers = #tpu.dot_dimension_numbers<[1], [0], [0], [1], [0, 0, 1, 1], [], []>} : vector<64x16xf32>, vector<16x32xf32>, vector<64x32xf32> -> vector<64x32xf32>
    %c0_3 = arith.constant 0 : index
    %c0_4 = arith.constant 0 : index
    %8 = vector.load %arg2[%c0_3, %c0_4] : memref<1x32xf32, #tpu.memory_space<vmem>>, vector<1x32xf32>
    %c0_5 = arith.constant 0 : index
    %c0_6 = arith.constant 0 : index
    %9 = vector.load %arg3[%c0_5, %c0_6] : memref<1x32xf32, #tpu.memory_space<vmem>>, vector<1x32xf32>
    %cst_7 = arith.constant dense<0.000000e+00> : vector<64xf32>
    %10 = vector.multi_reduction <add>, %7, %cst_7 [1] : vector<64x32xf32> to vector<64xf32>
    %11 = vector.shape_cast %10 : vector<64xf32> to vector<64x1xf32>
    %cst_8 = arith.constant 3.200000e+01 : f32
    %12 = vector.broadcast %cst_8 : f32 to vector<64x1xf32>
    %13 = arith.divf %11, %12 : vector<64x1xf32>
    %14 = vector.broadcast %13 : vector<64x1xf32> to vector<64x32xf32>
    %15 = arith.subf %7, %14 : vector<64x32xf32>
    %16 = arith.mulf %15, %15 : vector<64x32xf32>
    %cst_9 = arith.constant dense<0.000000e+00> : vector<64xf32>
    %17 = vector.multi_reduction <add>, %16, %cst_9 [1] : vector<64x32xf32> to vector<64xf32>
    %18 = vector.shape_cast %17 : vector<64xf32> to vector<64x1xf32>
    %cst_10 = arith.constant 3.200000e+01 : f32
    %19 = vector.broadcast %cst_10 : f32 to vector<64x1xf32>
    %20 = arith.divf %18, %19 : vector<64x1xf32>
    %21 = vector.broadcast %13 : vector<64x1xf32> to vector<64x32xf32>
    %22 = arith.subf %7, %21 : vector<64x32xf32>
    %cst_11 = arith.constant 9.99999974E-6 : f32
    %23 = vector.broadcast %cst_11 : f32 to vector<64x1xf32>
    %24 = arith.addf %20, %23 : vector<64x1xf32>
    %25 = math.rsqrt %24 : vector<64x1xf32>
    %26 = vector.broadcast %25 : vector<64x1xf32> to vector<64x32xf32>
    %27 = arith.mulf %22, %26 : vector<64x32xf32>
    %28 = vector.broadcast %8 : vector<1x32xf32> to vector<64x32xf32>
    %29 = arith.mulf %27, %28 : vector<64x32xf32>
    %30 = vector.broadcast %9 : vector<1x32xf32> to vector<64x32xf32>
    %31 = arith.addf %29, %30 : vector<64x32xf32>
    %c0_12 = arith.constant 0 : index
    %c0_13 = arith.constant 0 : index
    %32 = vector.load %arg4[%c0_12, %c0_13] : memref<32x128xf32, #tpu.memory_space<vmem>>, vector<32x128xf32>
    %cst_14 = arith.constant dense<0.000000e+00> : vector<64x128xf32>
    %33 = tpu.matmul %31, %32, %cst_14 {dimension_numbers = #tpu.dot_dimension_numbers<[1], [0], [0], [1], [0, 0, 1, 1], [], []>} : vector<64x32xf32>, vector<32x128xf32>, vector<64x128xf32> -> vector<64x128xf32>
    %c0_15 = arith.constant 0 : index
    %c0_16 = arith.constant 0 : index
    %34 = vector.load %arg5[%c0_15, %c0_16] : memref<1x128xf32, #tpu.memory_space<vmem>>, vector<1x128xf32>
    %35 = vector.broadcast %34 : vector<1x128xf32> to vector<64x128xf32>
    %36 = arith.addf %33, %35 : vector<64x128xf32>
    %c0_17 = arith.constant 0 : index
    %c0_18 = arith.constant 0 : index
    %37 = vector.load %arg21[%c0_17, %c0_18] : memref<64x128xf32, #tpu.memory_space<vmem>>, vector<64x128xf32>
    tpu.vector_store %arg21[%c0_17, %c0_18], %36 {strides = array<i32>} : memref<64x128xf32, #tpu.memory_space<vmem>>, vector<64x128xf32>,
    %c0_19 = arith.constant 0 : index
    %c0_20 = arith.constant 0 : index
    %38 = vector.load %arg6[%c0_19, %c0_20] : memref<32x128xf32, #tpu.memory_space<vmem>>, vector<32x128xf32>
    %c0_21 = arith.constant 0 : index
    %c0_22 = arith.constant 0 : index
    %39 = vector.load %arg7[%c0_21, %c0_22] : memref<8x32xf32, #tpu.memory_space<vmem>>, vector<8x32xf32>
    %c0_23 = arith.constant 0 : index
    %c0_24 = arith.constant 0 : index
    %40 = vector.load %arg8[%c0_23, %c0_24] : memref<8x32xf32, #tpu.memory_space<vmem>>, vector<8x32xf32>
    %c0_25 = arith.constant 0 : index
    %c0_26 = arith.constant 0 : index
    %41 = vector.load %arg21[%c0_25, %c0_26] : memref<64x128xf32, #tpu.memory_space<vmem>>, vector<8x128xf32>
    %cst_27 = arith.constant dense<0.000000e+00> : vector<8x128xf32>
    %42 = tpu.matmul %39, %38, %cst_27 {dimension_numbers = #tpu.dot_dimension_numbers<[1], [0], [0], [1], [0, 0, 1, 1], [], []>} : vector<8x32xf32>, vector<32x128xf32>, vector<8x128xf32> -> vector<8x128xf32>
    %43 = arith.addf %41, %42 : vector<8x128xf32>
    %44 = vector.extract_strided_slice %43 {offsets = [0, 0], sizes = [8, 32], strides = [1, 1]} : vector<8x128xf32> to vector<8x32xf32>
    %45 = arith.negf %44 : vector<8x32xf32>
    %46 = math.exp %45 : vector<8x32xf32>
    %cst_28 = arith.constant 1.000000e+00 : f32
    %47 = vector.broadcast %cst_28 : f32 to vector<8x32xf32>
    %48 = arith.addf %47, %46 : vector<8x32xf32>
    %49 = arith.divf %47, %48 : vector<8x32xf32>
    %50 = vector.extract_strided_slice %43 {offsets = [0, 32], sizes = [8, 32], strides = [1, 1]} : vector<8x128xf32> to vector<8x32xf32>
    %51 = arith.negf %50 : vector<8x32xf32>
    %52 = math.exp %51 : vector<8x32xf32>
    %cst_29 = arith.constant 1.000000e+00 : f32
    %53 = vector.broadcast %cst_29 : f32 to vector<8x32xf32>
    %54 = arith.addf %53, %52 : vector<8x32xf32>
    %55 = arith.divf %53, %54 : vector<8x32xf32>
    %56 = vector.extract_strided_slice %43 {offsets = [0, 64], sizes = [8, 32], strides = [1, 1]} : vector<8x128xf32> to vector<8x32xf32>
    %57 = math.tanh %56 : vector<8x32xf32>
    %58 = vector.extract_strided_slice %43 {offsets = [0, 96], sizes = [8, 32], strides = [1, 1]} : vector<8x128xf32> to vector<8x32xf32>
    %59 = arith.negf %58 : vector<8x32xf32>
    %60 = math.exp %59 : vector<8x32xf32>
    %cst_30 = arith.constant 1.000000e+00 : f32
    %61 = vector.broadcast %cst_30 : f32 to vector<8x32xf32>
    %62 = arith.addf %61, %60 : vector<8x32xf32>
    %63 = arith.divf %61, %62 : vector<8x32xf32>
    %64 = arith.mulf %55, %40 : vector<8x32xf32>
    %65 = arith.mulf %49, %57 : vector<8x32xf32>
    %66 = arith.addf %64, %65 : vector<8x32xf32>
    %67 = math.tanh %66 : vector<8x32xf32>
    %68 = arith.mulf %63, %67 : vector<8x32xf32>
    %c0_31 = arith.constant 0 : index
    %c0_32 = arith.constant 0 : index
    %69 = vector.load %arg22[%c0_31, %c0_32] : memref<64x32xf32, #tpu.memory_space<vmem>>, vector<8x32xf32>
    tpu.vector_store %arg22[%c0_31, %c0_32], %68 {strides = array<i32>} : memref<64x32xf32, #tpu.memory_space<vmem>>, vector<8x32xf32>,
    %c8 = arith.constant 8 : index
    %c0_33 = arith.constant 0 : index
    %70 = vector.load %arg21[%c8, %c0_33] : memref<64x128xf32, #tpu.memory_space<vmem>>, vector<8x128xf32>
    %cst_34 = arith.constant dense<0.000000e+00> : vector<8x128xf32>
    %71 = tpu.matmul %68, %38, %cst_34 {dimension_numbers = #tpu.dot_dimension_numbers<[1], [0], [0], [1], [0, 0, 1, 1], [], []>} : vector<8x32xf32>, vector<32x128xf32>, vector<8x128xf32> -> vector<8x128xf32>
    %72 = arith.addf %70, %71 : vector<8x128xf32>
    %73 = vector.extract_strided_slice %72 {offsets = [0, 0], sizes = [8, 32], strides = [1, 1]} : vector<8x128xf32> to vector<8x32xf32>
    %74 = arith.negf %73 : vector<8x32xf32>
    %75 = math.exp %74 : vector<8x32xf32>
    %cst_35 = arith.constant 1.000000e+00 : f32
    %76 = vector.broadcast %cst_35 : f32 to vector<8x32xf32>
    %77 = arith.addf %76, %75 : vector<8x32xf32>
    %78 = arith.divf %76, %77 : vector<8x32xf32>
    %79 = vector.extract_strided_slice %72 {offsets = [0, 32], sizes = [8, 32], strides = [1, 1]} : vector<8x128xf32> to vector<8x32xf32>
    %80 = arith.negf %79 : vector<8x32xf32>
    %81 = math.exp %80 : vector<8x32xf32>
    %cst_36 = arith.constant 1.000000e+00 : f32
    %82 = vector.broadcast %cst_36 : f32 to vector<8x32xf32>
    %83 = arith.addf %82, %81 : vector<8x32xf32>
    %84 = arith.divf %82, %83 : vector<8x32xf32>
    %85 = vector.extract_strided_slice %72 {offsets = [0, 64], sizes = [8, 32], strides = [1, 1]} : vector<8x128xf32> to vector<8x32xf32>
    %86 = math.tanh %85 : vector<8x32xf32>
    %87 = vector.extract_strided_slice %72 {offsets = [0, 96], sizes = [8, 32], strides = [1, 1]} : vector<8x128xf32> to vector<8x32xf32>
    %88 = arith.negf %87 : vector<8x32xf32>
    %89 = math.exp %88 : vector<8x32xf32>
    %cst_37 = arith.constant 1.000000e+00 : f32
    %90 = vector.broadcast %cst_37 : f32 to vector<8x32xf32>
    %91 = arith.addf %90, %89 : vector<8x32xf32>
    %92 = arith.divf %90, %91 : vector<8x32xf32>
    %93 = arith.mulf %84, %66 : vector<8x32xf32>
    %94 = arith.mulf %78, %86 : vector<8x32xf32>
    %95 = arith.addf %93, %94 : vector<8x32xf32>
    %96 = math.tanh %95 : vector<8x32xf32>
    %97 = arith.mulf %92, %96 : vector<8x32xf32>
    %c8_38 = arith.constant 8 : index
    %c0_39 = arith.constant 0 : index
    %98 = vector.load %arg22[%c8_38, %c0_39] : memref<64x32xf32, #tpu.memory_space<vmem>>, vector<8x32xf32>
    tpu.vector_store %arg22[%c8_38, %c0_39], %97 {strides = array<i32>} : memref<64x32xf32, #tpu.memory_space<vmem>>, vector<8x32xf32>,
    %c16 = arith.constant 16 : index
    %c0_40 = arith.constant 0 : index
    %99 = vector.load %arg21[%c16, %c0_40] : memref<64x128xf32, #tpu.memory_space<vmem>>, vector<8x128xf32>
    %cst_41 = arith.constant dense<0.000000e+00> : vector<8x128xf32>
    %100 = tpu.matmul %97, %38, %cst_41 {dimension_numbers = #tpu.dot_dimension_numbers<[1], [0], [0], [1], [0, 0, 1, 1], [], []>} : vector<8x32xf32>, vector<32x128xf32>, vector<8x128xf32> -> vector<8x128xf32>
    %101 = arith.addf %99, %100 : vector<8x128xf32>
    %102 = vector.extract_strided_slice %101 {offsets = [0, 0], sizes = [8, 32], strides = [1, 1]} : vector<8x128xf32> to vector<8x32xf32>
    %103 = arith.negf %102 : vector<8x32xf32>
    %104 = math.exp %103 : vector<8x32xf32>
    %cst_42 = arith.constant 1.000000e+00 : f32
    %105 = vector.broadcast %cst_42 : f32 to vector<8x32xf32>
    %106 = arith.addf %105, %104 : vector<8x32xf32>
    %107 = arith.divf %105, %106 : vector<8x32xf32>
    %108 = vector.extract_strided_slice %101 {offsets = [0, 32], sizes = [8, 32], strides = [1, 1]} : vector<8x128xf32> to vector<8x32xf32>
    %109 = arith.negf %108 : vector<8x32xf32>
    %110 = math.exp %109 : vector<8x32xf32>
    %cst_43 = arith.constant 1.000000e+00 : f32
    %111 = vector.broadcast %cst_43 : f32 to vector<8x32xf32>
    %112 = arith.addf %111, %110 : vector<8x32xf32>
    %113 = arith.divf %111, %112 : vector<8x32xf32>
    %114 = vector.extract_strided_slice %101 {offsets = [0, 64], sizes = [8, 32], strides = [1, 1]} : vector<8x128xf32> to vector<8x32xf32>
    %115 = math.tanh %114 : vector<8x32xf32>
    %116 = vector.extract_strided_slice %101 {offsets = [0, 96], sizes = [8, 32], strides = [1, 1]} : vector<8x128xf32> to vector<8x32xf32>
    %117 = arith.negf %116 : vector<8x32xf32>
    %118 = math.exp %117 : vector<8x32xf32>
    %cst_44 = arith.constant 1.000000e+00 : f32
    %119 = vector.broadcast %cst_44 : f32 to vector<8x32xf32>
    %120 = arith.addf %119, %118 : vector<8x32xf32>
    %121 = arith.divf %119, %120 : vector<8x32xf32>
    %122 = arith.mulf %113, %95 : vector<8x32xf32>
    %123 = arith.mulf %107, %115 : vector<8x32xf32>
    %124 = arith.addf %122, %123 : vector<8x32xf32>
    %125 = math.tanh %124 : vector<8x32xf32>
    %126 = arith.mulf %121, %125 : vector<8x32xf32>
    %c16_45 = arith.constant 16 : index
    %c0_46 = arith.constant 0 : index
    %127 = vector.load %arg22[%c16_45, %c0_46] : memref<64x32xf32, #tpu.memory_space<vmem>>, vector<8x32xf32>
    tpu.vector_store %arg22[%c16_45, %c0_46], %126 {strides = array<i32>} : memref<64x32xf32, #tpu.memory_space<vmem>>, vector<8x32xf32>,
    %c24 = arith.constant 24 : index
    %c0_47 = arith.constant 0 : index
    %128 = vector.load %arg21[%c24, %c0_47] : memref<64x128xf32, #tpu.memory_space<vmem>>, vector<8x128xf32>
    %cst_48 = arith.constant dense<0.000000e+00> : vector<8x128xf32>
    %129 = tpu.matmul %126, %38, %cst_48 {dimension_numbers = #tpu.dot_dimension_numbers<[1], [0], [0], [1], [0, 0, 1, 1], [], []>} : vector<8x32xf32>, vector<32x128xf32>, vector<8x128xf32> -> vector<8x128xf32>
    %130 = arith.addf %128, %129 : vector<8x128xf32>
    %131 = vector.extract_strided_slice %130 {offsets = [0, 0], sizes = [8, 32], strides = [1, 1]} : vector<8x128xf32> to vector<8x32xf32>
    %132 = arith.negf %131 : vector<8x32xf32>
    %133 = math.exp %132 : vector<8x32xf32>
    %cst_49 = arith.constant 1.000000e+00 : f32
    %134 = vector.broadcast %cst_49 : f32 to vector<8x32xf32>
    %135 = arith.addf %134, %133 : vector<8x32xf32>
    %136 = arith.divf %134, %135 : vector<8x32xf32>
    %137 = vector.extract_strided_slice %130 {offsets = [0, 32], sizes = [8, 32], strides = [1, 1]} : vector<8x128xf32> to vector<8x32xf32>
    %138 = arith.negf %137 : vector<8x32xf32>
    %139 = math.exp %138 : vector<8x32xf32>
    %cst_50 = arith.constant 1.000000e+00 : f32
    %140 = vector.broadcast %cst_50 : f32 to vector<8x32xf32>
    %141 = arith.addf %140, %139 : vector<8x32xf32>
    %142 = arith.divf %140, %141 : vector<8x32xf32>
    %143 = vector.extract_strided_slice %130 {offsets = [0, 64], sizes = [8, 32], strides = [1, 1]} : vector<8x128xf32> to vector<8x32xf32>
    %144 = math.tanh %143 : vector<8x32xf32>
    %145 = vector.extract_strided_slice %130 {offsets = [0, 96], sizes = [8, 32], strides = [1, 1]} : vector<8x128xf32> to vector<8x32xf32>
    %146 = arith.negf %145 : vector<8x32xf32>
    %147 = math.exp %146 : vector<8x32xf32>
    %cst_51 = arith.constant 1.000000e+00 : f32
    %148 = vector.broadcast %cst_51 : f32 to vector<8x32xf32>
    %149 = arith.addf %148, %147 : vector<8x32xf32>
    %150 = arith.divf %148, %149 : vector<8x32xf32>
    %151 = arith.mulf %142, %124 : vector<8x32xf32>
    %152 = arith.mulf %136, %144 : vector<8x32xf32>
    %153 = arith.addf %151, %152 : vector<8x32xf32>
    %154 = math.tanh %153 : vector<8x32xf32>
    %155 = arith.mulf %150, %154 : vector<8x32xf32>
    %c24_52 = arith.constant 24 : index
    %c0_53 = arith.constant 0 : index
    %156 = vector.load %arg22[%c24_52, %c0_53] : memref<64x32xf32, #tpu.memory_space<vmem>>, vector<8x32xf32>
    tpu.vector_store %arg22[%c24_52, %c0_53], %155 {strides = array<i32>} : memref<64x32xf32, #tpu.memory_space<vmem>>, vector<8x32xf32>,
    %c32 = arith.constant 32 : index
    %c0_54 = arith.constant 0 : index
    %157 = vector.load %arg21[%c32, %c0_54] : memref<64x128xf32, #tpu.memory_space<vmem>>, vector<8x128xf32>
    %cst_55 = arith.constant dense<0.000000e+00> : vector<8x128xf32>
    %158 = tpu.matmul %155, %38, %cst_55 {dimension_numbers = #tpu.dot_dimension_numbers<[1], [0], [0], [1], [0, 0, 1, 1], [], []>} : vector<8x32xf32>, vector<32x128xf32>, vector<8x128xf32> -> vector<8x128xf32>
    %159 = arith.addf %157, %158 : vector<8x128xf32>
    %160 = vector.extract_strided_slice %159 {offsets = [0, 0], sizes = [8, 32], strides = [1, 1]} : vector<8x128xf32> to vector<8x32xf32>
    %161 = arith.negf %160 : vector<8x32xf32>
    %162 = math.exp %161 : vector<8x32xf32>
    %cst_56 = arith.constant 1.000000e+00 : f32
    %163 = vector.broadcast %cst_56 : f32 to vector<8x32xf32>
    %164 = arith.addf %163, %162 : vector<8x32xf32>
    %165 = arith.divf %163, %164 : vector<8x32xf32>
    %166 = vector.extract_strided_slice %159 {offsets = [0, 32], sizes = [8, 32], strides = [1, 1]} : vector<8x128xf32> to vector<8x32xf32>
    %167 = arith.negf %166 : vector<8x32xf32>
    %168 = math.exp %167 : vector<8x32xf32>
    %cst_57 = arith.constant 1.000000e+00 : f32
    %169 = vector.broadcast %cst_57 : f32 to vector<8x32xf32>
    %170 = arith.addf %169, %168 : vector<8x32xf32>
    %171 = arith.divf %169, %170 : vector<8x32xf32>
    %172 = vector.extract_strided_slice %159 {offsets = [0, 64], sizes = [8, 32], strides = [1, 1]} : vector<8x128xf32> to vector<8x32xf32>
    %173 = math.tanh %172 : vector<8x32xf32>
    %174 = vector.extract_strided_slice %159 {offsets = [0, 96], sizes = [8, 32], strides = [1, 1]} : vector<8x128xf32> to vector<8x32xf32>
    %175 = arith.negf %174 : vector<8x32xf32>
    %176 = math.exp %175 : vector<8x32xf32>
    %cst_58 = arith.constant 1.000000e+00 : f32
    %177 = vector.broadcast %cst_58 : f32 to vector<8x32xf32>
    %178 = arith.addf %177, %176 : vector<8x32xf32>
    %179 = arith.divf %177, %178 : vector<8x32xf32>
    %180 = arith.mulf %171, %153 : vector<8x32xf32>
    %181 = arith.mulf %165, %173 : vector<8x32xf32>
    %182 = arith.addf %180, %181 : vector<8x32xf32>
    %183 = math.tanh %182 : vector<8x32xf32>
    %184 = arith.mulf %179, %183 : vector<8x32xf32>
    %c32_59 = arith.constant 32 : index
    %c0_60 = arith.constant 0 : index
    %185 = vector.load %arg22[%c32_59, %c0_60] : memref<64x32xf32, #tpu.memory_space<vmem>>, vector<8x32xf32>
    tpu.vector_store %arg22[%c32_59, %c0_60], %184 {strides = array<i32>} : memref<64x32xf32, #tpu.memory_space<vmem>>, vector<8x32xf32>,
    %c40 = arith.constant 40 : index
    %c0_61 = arith.constant 0 : index
    %186 = vector.load %arg21[%c40, %c0_61] : memref<64x128xf32, #tpu.memory_space<vmem>>, vector<8x128xf32>
    %cst_62 = arith.constant dense<0.000000e+00> : vector<8x128xf32>
    %187 = tpu.matmul %184, %38, %cst_62 {dimension_numbers = #tpu.dot_dimension_numbers<[1], [0], [0], [1], [0, 0, 1, 1], [], []>} : vector<8x32xf32>, vector<32x128xf32>, vector<8x128xf32> -> vector<8x128xf32>
    %188 = arith.addf %186, %187 : vector<8x128xf32>
    %189 = vector.extract_strided_slice %188 {offsets = [0, 0], sizes = [8, 32], strides = [1, 1]} : vector<8x128xf32> to vector<8x32xf32>
    %190 = arith.negf %189 : vector<8x32xf32>
    %191 = math.exp %190 : vector<8x32xf32>
    %cst_63 = arith.constant 1.000000e+00 : f32
    %192 = vector.broadcast %cst_63 : f32 to vector<8x32xf32>
    %193 = arith.addf %192, %191 : vector<8x32xf32>
    %194 = arith.divf %192, %193 : vector<8x32xf32>
    %195 = vector.extract_strided_slice %188 {offsets = [0, 32], sizes = [8, 32], strides = [1, 1]} : vector<8x128xf32> to vector<8x32xf32>
    %196 = arith.negf %195 : vector<8x32xf32>
    %197 = math.exp %196 : vector<8x32xf32>
    %cst_64 = arith.constant 1.000000e+00 : f32
    %198 = vector.broadcast %cst_64 : f32 to vector<8x32xf32>
    %199 = arith.addf %198, %197 : vector<8x32xf32>
    %200 = arith.divf %198, %199 : vector<8x32xf32>
    %201 = vector.extract_strided_slice %188 {offsets = [0, 64], sizes = [8, 32], strides = [1, 1]} : vector<8x128xf32> to vector<8x32xf32>
    %202 = math.tanh %201 : vector<8x32xf32>
    %203 = vector.extract_strided_slice %188 {offsets = [0, 96], sizes = [8, 32], strides = [1, 1]} : vector<8x128xf32> to vector<8x32xf32>
    %204 = arith.negf %203 : vector<8x32xf32>
    %205 = math.exp %204 : vector<8x32xf32>
    %cst_65 = arith.constant 1.000000e+00 : f32
    %206 = vector.broadcast %cst_65 : f32 to vector<8x32xf32>
    %207 = arith.addf %206, %205 : vector<8x32xf32>
    %208 = arith.divf %206, %207 : vector<8x32xf32>
    %209 = arith.mulf %200, %182 : vector<8x32xf32>
    %210 = arith.mulf %194, %202 : vector<8x32xf32>
    %211 = arith.addf %209, %210 : vector<8x32xf32>
    %212 = math.tanh %211 : vector<8x32xf32>
    %213 = arith.mulf %208, %212 : vector<8x32xf32>
    %c40_66 = arith.constant 40 : index
    %c0_67 = arith.constant 0 : index
    %214 = vector.load %arg22[%c40_66, %c0_67] : memref<64x32xf32, #tpu.memory_space<vmem>>, vector<8x32xf32>
    tpu.vector_store %arg22[%c40_66, %c0_67], %213 {strides = array<i32>} : memref<64x32xf32, #tpu.memory_space<vmem>>, vector<8x32xf32>,
    %c48 = arith.constant 48 : index
    %c0_68 = arith.constant 0 : index
    %215 = vector.load %arg21[%c48, %c0_68] : memref<64x128xf32, #tpu.memory_space<vmem>>, vector<8x128xf32>
    %cst_69 = arith.constant dense<0.000000e+00> : vector<8x128xf32>
    %216 = tpu.matmul %213, %38, %cst_69 {dimension_numbers = #tpu.dot_dimension_numbers<[1], [0], [0], [1], [0, 0, 1, 1], [], []>} : vector<8x32xf32>, vector<32x128xf32>, vector<8x128xf32> -> vector<8x128xf32>
    %217 = arith.addf %215, %216 : vector<8x128xf32>
    %218 = vector.extract_strided_slice %217 {offsets = [0, 0], sizes = [8, 32], strides = [1, 1]} : vector<8x128xf32> to vector<8x32xf32>
    %219 = arith.negf %218 : vector<8x32xf32>
    %220 = math.exp %219 : vector<8x32xf32>
    %cst_70 = arith.constant 1.000000e+00 : f32
    %221 = vector.broadcast %cst_70 : f32 to vector<8x32xf32>
    %222 = arith.addf %221, %220 : vector<8x32xf32>
    %223 = arith.divf %221, %222 : vector<8x32xf32>
    %224 = vector.extract_strided_slice %217 {offsets = [0, 32], sizes = [8, 32], strides = [1, 1]} : vector<8x128xf32> to vector<8x32xf32>
    %225 = arith.negf %224 : vector<8x32xf32>
    %226 = math.exp %225 : vector<8x32xf32>
    %cst_71 = arith.constant 1.000000e+00 : f32
    %227 = vector.broadcast %cst_71 : f32 to vector<8x32xf32>
    %228 = arith.addf %227, %226 : vector<8x32xf32>
    %229 = arith.divf %227, %228 : vector<8x32xf32>
    %230 = vector.extract_strided_slice %217 {offsets = [0, 64], sizes = [8, 32], strides = [1, 1]} : vector<8x128xf32> to vector<8x32xf32>
    %231 = math.tanh %230 : vector<8x32xf32>
    %232 = vector.extract_strided_slice %217 {offsets = [0, 96], sizes = [8, 32], strides = [1, 1]} : vector<8x128xf32> to vector<8x32xf32>
    %233 = arith.negf %232 : vector<8x32xf32>
    %234 = math.exp %233 : vector<8x32xf32>
    %cst_72 = arith.constant 1.000000e+00 : f32
    %235 = vector.broadcast %cst_72 : f32 to vector<8x32xf32>
    %236 = arith.addf %235, %234 : vector<8x32xf32>
    %237 = arith.divf %235, %236 : vector<8x32xf32>
    %238 = arith.mulf %229, %211 : vector<8x32xf32>
    %239 = arith.mulf %223, %231 : vector<8x32xf32>
    %240 = arith.addf %238, %239 : vector<8x32xf32>
    %241 = math.tanh %240 : vector<8x32xf32>
    %242 = arith.mulf %237, %241 : vector<8x32xf32>
    %c48_73 = arith.constant 48 : index
    %c0_74 = arith.constant 0 : index
    %243 = vector.load %arg22[%c48_73, %c0_74] : memref<64x32xf32, #tpu.memory_space<vmem>>, vector<8x32xf32>
    tpu.vector_store %arg22[%c48_73, %c0_74], %242 {strides = array<i32>} : memref<64x32xf32, #tpu.memory_space<vmem>>, vector<8x32xf32>,
    %c56 = arith.constant 56 : index
    %c0_75 = arith.constant 0 : index
    %244 = vector.load %arg21[%c56, %c0_75] : memref<64x128xf32, #tpu.memory_space<vmem>>, vector<8x128xf32>
    %cst_76 = arith.constant dense<0.000000e+00> : vector<8x128xf32>
    %245 = tpu.matmul %242, %38, %cst_76 {dimension_numbers = #tpu.dot_dimension_numbers<[1], [0], [0], [1], [0, 0, 1, 1], [], []>} : vector<8x32xf32>, vector<32x128xf32>, vector<8x128xf32> -> vector<8x128xf32>
    %246 = arith.addf %244, %245 : vector<8x128xf32>
    %247 = vector.extract_strided_slice %246 {offsets = [0, 0], sizes = [8, 32], strides = [1, 1]} : vector<8x128xf32> to vector<8x32xf32>
    %248 = arith.negf %247 : vector<8x32xf32>
    %249 = math.exp %248 : vector<8x32xf32>
    %cst_77 = arith.constant 1.000000e+00 : f32
    %250 = vector.broadcast %cst_77 : f32 to vector<8x32xf32>
    %251 = arith.addf %250, %249 : vector<8x32xf32>
    %252 = arith.divf %250, %251 : vector<8x32xf32>
    %253 = vector.extract_strided_slice %246 {offsets = [0, 32], sizes = [8, 32], strides = [1, 1]} : vector<8x128xf32> to vector<8x32xf32>
    %254 = arith.negf %253 : vector<8x32xf32>
    %255 = math.exp %254 : vector<8x32xf32>
    %cst_78 = arith.constant 1.000000e+00 : f32
    %256 = vector.broadcast %cst_78 : f32 to vector<8x32xf32>
    %257 = arith.addf %256, %255 : vector<8x32xf32>
    %258 = arith.divf %256, %257 : vector<8x32xf32>
    %259 = vector.extract_strided_slice %246 {offsets = [0, 64], sizes = [8, 32], strides = [1, 1]} : vector<8x128xf32> to vector<8x32xf32>
    %260 = math.tanh %259 : vector<8x32xf32>
    %261 = vector.extract_strided_slice %246 {offsets = [0, 96], sizes = [8, 32], strides = [1, 1]} : vector<8x128xf32> to vector<8x32xf32>
    %262 = arith.negf %261 : vector<8x32xf32>
    %263 = math.exp %262 : vector<8x32xf32>
    %cst_79 = arith.constant 1.000000e+00 : f32
    %264 = vector.broadcast %cst_79 : f32 to vector<8x32xf32>
    %265 = arith.addf %264, %263 : vector<8x32xf32>
    %266 = arith.divf %264, %265 : vector<8x32xf32>
    %267 = arith.mulf %258, %240 : vector<8x32xf32>
    %268 = arith.mulf %252, %260 : vector<8x32xf32>
    %269 = arith.addf %267, %268 : vector<8x32xf32>
    %270 = math.tanh %269 : vector<8x32xf32>
    %271 = arith.mulf %266, %270 : vector<8x32xf32>
    %c56_80 = arith.constant 56 : index
    %c0_81 = arith.constant 0 : index
    %272 = vector.load %arg22[%c56_80, %c0_81] : memref<64x32xf32, #tpu.memory_space<vmem>>, vector<8x32xf32>
    tpu.vector_store %arg22[%c56_80, %c0_81], %271 {strides = array<i32>} : memref<64x32xf32, #tpu.memory_space<vmem>>, vector<8x32xf32>,
    %c0_82 = arith.constant 0 : index
    %c0_83 = arith.constant 0 : index
    %c0_84 = arith.constant 0 : index
    %273 = vector.load %arg19[%c0_82, %c0_83, %c0_84] : memref<2x8x32xf32, #tpu.memory_space<vmem>>, vector<1x8x32xf32>
    %274 = vector.shape_cast %273 : vector<1x8x32xf32> to vector<8x32xf32>
    %275 = vector.shape_cast %271 : vector<8x32xf32> to vector<1x8x32xf32>
    tpu.vector_store %arg19[%c0_82, %c0_83, %c0_84], %275 {strides = array<i32>} : memref<2x8x32xf32, #tpu.memory_space<vmem>>, vector<1x8x32xf32>,
    %c0_85 = arith.constant 0 : index
    %c0_86 = arith.constant 0 : index
    %c0_87 = arith.constant 0 : index
    %276 = vector.load %arg20[%c0_85, %c0_86, %c0_87] : memref<2x8x32xf32, #tpu.memory_space<vmem>>, vector<1x8x32xf32>
    %277 = vector.shape_cast %276 : vector<1x8x32xf32> to vector<8x32xf32>
    %278 = vector.shape_cast %269 : vector<8x32xf32> to vector<1x8x32xf32>
    tpu.vector_store %arg20[%c0_85, %c0_86, %c0_87], %278 {strides = array<i32>} : memref<2x8x32xf32, #tpu.memory_space<vmem>>, vector<1x8x32xf32>,
    %c0_88 = arith.constant 0 : index
    %c0_89 = arith.constant 0 : index
    %279 = vector.load %arg22[%c0_88, %c0_89] : memref<64x32xf32, #tpu.memory_space<vmem>>, vector<64x32xf32>
    %c0_90 = arith.constant 0 : index
    %c0_91 = arith.constant 0 : index
    %280 = vector.load %arg9[%c0_90, %c0_91] : memref<32x128xf32, #tpu.memory_space<vmem>>, vector<32x128xf32>
    %cst_92 = arith.constant dense<0.000000e+00> : vector<64x128xf32>
    %281 = tpu.matmul %279, %280, %cst_92 {dimension_numbers = #tpu.dot_dimension_numbers<[1], [0], [0], [1], [0, 0, 1, 1], [], []>} : vector<64x32xf32>, vector<32x128xf32>, vector<64x128xf32> -> vector<64x128xf32>
    %c0_93 = arith.constant 0 : index
    %c0_94 = arith.constant 0 : index
    %282 = vector.load %arg10[%c0_93, %c0_94] : memref<1x128xf32, #tpu.memory_space<vmem>>, vector<1x128xf32>
    %283 = vector.broadcast %282 : vector<1x128xf32> to vector<64x128xf32>
    %284 = arith.addf %281, %283 : vector<64x128xf32>
    %c0_95 = arith.constant 0 : index
    %c0_96 = arith.constant 0 : index
    %285 = vector.load %arg21[%c0_95, %c0_96] : memref<64x128xf32, #tpu.memory_space<vmem>>, vector<64x128xf32>
    tpu.vector_store %arg21[%c0_95, %c0_96], %284 {strides = array<i32>} : memref<64x128xf32, #tpu.memory_space<vmem>>, vector<64x128xf32>,
    %c0_97 = arith.constant 0 : index
    %c0_98 = arith.constant 0 : index
    %286 = vector.load %arg11[%c0_97, %c0_98] : memref<32x128xf32, #tpu.memory_space<vmem>>, vector<32x128xf32>
    %c0_99 = arith.constant 0 : index
    %c0_100 = arith.constant 0 : index
    %287 = vector.load %arg12[%c0_99, %c0_100] : memref<8x32xf32, #tpu.memory_space<vmem>>, vector<8x32xf32>
    %c0_101 = arith.constant 0 : index
    %c0_102 = arith.constant 0 : index
    %288 = vector.load %arg13[%c0_101, %c0_102] : memref<8x32xf32, #tpu.memory_space<vmem>>, vector<8x32xf32>
    %c0_103 = arith.constant 0 : index
    %c0_104 = arith.constant 0 : index
    %289 = vector.load %arg21[%c0_103, %c0_104] : memref<64x128xf32, #tpu.memory_space<vmem>>, vector<8x128xf32>
    %cst_105 = arith.constant dense<0.000000e+00> : vector<8x128xf32>
    %290 = tpu.matmul %287, %286, %cst_105 {dimension_numbers = #tpu.dot_dimension_numbers<[1], [0], [0], [1], [0, 0, 1, 1], [], []>} : vector<8x32xf32>, vector<32x128xf32>, vector<8x128xf32> -> vector<8x128xf32>
    %291 = arith.addf %289, %290 : vector<8x128xf32>
    %292 = vector.extract_strided_slice %291 {offsets = [0, 0], sizes = [8, 32], strides = [1, 1]} : vector<8x128xf32> to vector<8x32xf32>
    %293 = arith.negf %292 : vector<8x32xf32>
    %294 = math.exp %293 : vector<8x32xf32>
    %cst_106 = arith.constant 1.000000e+00 : f32
    %295 = vector.broadcast %cst_106 : f32 to vector<8x32xf32>
    %296 = arith.addf %295, %294 : vector<8x32xf32>
    %297 = arith.divf %295, %296 : vector<8x32xf32>
    %298 = vector.extract_strided_slice %291 {offsets = [0, 32], sizes = [8, 32], strides = [1, 1]} : vector<8x128xf32> to vector<8x32xf32>
    %299 = arith.negf %298 : vector<8x32xf32>
    %300 = math.exp %299 : vector<8x32xf32>
    %cst_107 = arith.constant 1.000000e+00 : f32
    %301 = vector.broadcast %cst_107 : f32 to vector<8x32xf32>
    %302 = arith.addf %301, %300 : vector<8x32xf32>
    %303 = arith.divf %301, %302 : vector<8x32xf32>
    %304 = vector.extract_strided_slice %291 {offsets = [0, 64], sizes = [8, 32], strides = [1, 1]} : vector<8x128xf32> to vector<8x32xf32>
    %305 = math.tanh %304 : vector<8x32xf32>
    %306 = vector.extract_strided_slice %291 {offsets = [0, 96], sizes = [8, 32], strides = [1, 1]} : vector<8x128xf32> to vector<8x32xf32>
    %307 = arith.negf %306 : vector<8x32xf32>
    %308 = math.exp %307 : vector<8x32xf32>
    %cst_108 = arith.constant 1.000000e+00 : f32
    %309 = vector.broadcast %cst_108 : f32 to vector<8x32xf32>
    %310 = arith.addf %309, %308 : vector<8x32xf32>
    %311 = arith.divf %309, %310 : vector<8x32xf32>
    %312 = arith.mulf %303, %288 : vector<8x32xf32>
    %313 = arith.mulf %297, %305 : vector<8x32xf32>
    %314 = arith.addf %312, %313 : vector<8x32xf32>
    %315 = math.tanh %314 : vector<8x32xf32>
    %316 = arith.mulf %311, %315 : vector<8x32xf32>
    %c0_109 = arith.constant 0 : index
    %c0_110 = arith.constant 0 : index
    %317 = vector.load %arg22[%c0_109, %c0_110] : memref<64x32xf32, #tpu.memory_space<vmem>>, vector<8x32xf32>
    tpu.vector_store %arg22[%c0_109, %c0_110], %316 {strides = array<i32>} : memref<64x32xf32, #tpu.memory_space<vmem>>, vector<8x32xf32>,
    %c8_111 = arith.constant 8 : index
    %c0_112 = arith.constant 0 : index
    %318 = vector.load %arg21[%c8_111, %c0_112] : memref<64x128xf32, #tpu.memory_space<vmem>>, vector<8x128xf32>
    %cst_113 = arith.constant dense<0.000000e+00> : vector<8x128xf32>
    %319 = tpu.matmul %316, %286, %cst_113 {dimension_numbers = #tpu.dot_dimension_numbers<[1], [0], [0], [1], [0, 0, 1, 1], [], []>} : vector<8x32xf32>, vector<32x128xf32>, vector<8x128xf32> -> vector<8x128xf32>
    %320 = arith.addf %318, %319 : vector<8x128xf32>
    %321 = vector.extract_strided_slice %320 {offsets = [0, 0], sizes = [8, 32], strides = [1, 1]} : vector<8x128xf32> to vector<8x32xf32>
    %322 = arith.negf %321 : vector<8x32xf32>
    %323 = math.exp %322 : vector<8x32xf32>
    %cst_114 = arith.constant 1.000000e+00 : f32
    %324 = vector.broadcast %cst_114 : f32 to vector<8x32xf32>
    %325 = arith.addf %324, %323 : vector<8x32xf32>
    %326 = arith.divf %324, %325 : vector<8x32xf32>
    %327 = vector.extract_strided_slice %320 {offsets = [0, 32], sizes = [8, 32], strides = [1, 1]} : vector<8x128xf32> to vector<8x32xf32>
    %328 = arith.negf %327 : vector<8x32xf32>
    %329 = math.exp %328 : vector<8x32xf32>
    %cst_115 = arith.constant 1.000000e+00 : f32
    %330 = vector.broadcast %cst_115 : f32 to vector<8x32xf32>
    %331 = arith.addf %330, %329 : vector<8x32xf32>
    %332 = arith.divf %330, %331 : vector<8x32xf32>
    %333 = vector.extract_strided_slice %320 {offsets = [0, 64], sizes = [8, 32], strides = [1, 1]} : vector<8x128xf32> to vector<8x32xf32>
    %334 = math.tanh %333 : vector<8x32xf32>
    %335 = vector.extract_strided_slice %320 {offsets = [0, 96], sizes = [8, 32], strides = [1, 1]} : vector<8x128xf32> to vector<8x32xf32>
    %336 = arith.negf %335 : vector<8x32xf32>
    %337 = math.exp %336 : vector<8x32xf32>
    %cst_116 = arith.constant 1.000000e+00 : f32
    %338 = vector.broadcast %cst_116 : f32 to vector<8x32xf32>
    %339 = arith.addf %338, %337 : vector<8x32xf32>
    %340 = arith.divf %338, %339 : vector<8x32xf32>
    %341 = arith.mulf %332, %314 : vector<8x32xf32>
    %342 = arith.mulf %326, %334 : vector<8x32xf32>
    %343 = arith.addf %341, %342 : vector<8x32xf32>
    %344 = math.tanh %343 : vector<8x32xf32>
    %345 = arith.mulf %340, %344 : vector<8x32xf32>
    %c8_117 = arith.constant 8 : index
    %c0_118 = arith.constant 0 : index
    %346 = vector.load %arg22[%c8_117, %c0_118] : memref<64x32xf32, #tpu.memory_space<vmem>>, vector<8x32xf32>
    tpu.vector_store %arg22[%c8_117, %c0_118], %345 {strides = array<i32>} : memref<64x32xf32, #tpu.memory_space<vmem>>, vector<8x32xf32>,
    %c16_119 = arith.constant 16 : index
    %c0_120 = arith.constant 0 : index
    %347 = vector.load %arg21[%c16_119, %c0_120] : memref<64x128xf32, #tpu.memory_space<vmem>>, vector<8x128xf32>
    %cst_121 = arith.constant dense<0.000000e+00> : vector<8x128xf32>
    %348 = tpu.matmul %345, %286, %cst_121 {dimension_numbers = #tpu.dot_dimension_numbers<[1], [0], [0], [1], [0, 0, 1, 1], [], []>} : vector<8x32xf32>, vector<32x128xf32>, vector<8x128xf32> -> vector<8x128xf32>
    %349 = arith.addf %347, %348 : vector<8x128xf32>
    %350 = vector.extract_strided_slice %349 {offsets = [0, 0], sizes = [8, 32], strides = [1, 1]} : vector<8x128xf32> to vector<8x32xf32>
    %351 = arith.negf %350 : vector<8x32xf32>
    %352 = math.exp %351 : vector<8x32xf32>
    %cst_122 = arith.constant 1.000000e+00 : f32
    %353 = vector.broadcast %cst_122 : f32 to vector<8x32xf32>
    %354 = arith.addf %353, %352 : vector<8x32xf32>
    %355 = arith.divf %353, %354 : vector<8x32xf32>
    %356 = vector.extract_strided_slice %349 {offsets = [0, 32], sizes = [8, 32], strides = [1, 1]} : vector<8x128xf32> to vector<8x32xf32>
    %357 = arith.negf %356 : vector<8x32xf32>
    %358 = math.exp %357 : vector<8x32xf32>
    %cst_123 = arith.constant 1.000000e+00 : f32
    %359 = vector.broadcast %cst_123 : f32 to vector<8x32xf32>
    %360 = arith.addf %359, %358 : vector<8x32xf32>
    %361 = arith.divf %359, %360 : vector<8x32xf32>
    %362 = vector.extract_strided_slice %349 {offsets = [0, 64], sizes = [8, 32], strides = [1, 1]} : vector<8x128xf32> to vector<8x32xf32>
    %363 = math.tanh %362 : vector<8x32xf32>
    %364 = vector.extract_strided_slice %349 {offsets = [0, 96], sizes = [8, 32], strides = [1, 1]} : vector<8x128xf32> to vector<8x32xf32>
    %365 = arith.negf %364 : vector<8x32xf32>
    %366 = math.exp %365 : vector<8x32xf32>
    %cst_124 = arith.constant 1.000000e+00 : f32
    %367 = vector.broadcast %cst_124 : f32 to vector<8x32xf32>
    %368 = arith.addf %367, %366 : vector<8x32xf32>
    %369 = arith.divf %367, %368 : vector<8x32xf32>
    %370 = arith.mulf %361, %343 : vector<8x32xf32>
    %371 = arith.mulf %355, %363 : vector<8x32xf32>
    %372 = arith.addf %370, %371 : vector<8x32xf32>
    %373 = math.tanh %372 : vector<8x32xf32>
    %374 = arith.mulf %369, %373 : vector<8x32xf32>
    %c16_125 = arith.constant 16 : index
    %c0_126 = arith.constant 0 : index
    %375 = vector.load %arg22[%c16_125, %c0_126] : memref<64x32xf32, #tpu.memory_space<vmem>>, vector<8x32xf32>
    tpu.vector_store %arg22[%c16_125, %c0_126], %374 {strides = array<i32>} : memref<64x32xf32, #tpu.memory_space<vmem>>, vector<8x32xf32>,
    %c24_127 = arith.constant 24 : index
    %c0_128 = arith.constant 0 : index
    %376 = vector.load %arg21[%c24_127, %c0_128] : memref<64x128xf32, #tpu.memory_space<vmem>>, vector<8x128xf32>
    %cst_129 = arith.constant dense<0.000000e+00> : vector<8x128xf32>
    %377 = tpu.matmul %374, %286, %cst_129 {dimension_numbers = #tpu.dot_dimension_numbers<[1], [0], [0], [1], [0, 0, 1, 1], [], []>} : vector<8x32xf32>, vector<32x128xf32>, vector<8x128xf32> -> vector<8x128xf32>
    %378 = arith.addf %376, %377 : vector<8x128xf32>
    %379 = vector.extract_strided_slice %378 {offsets = [0, 0], sizes = [8, 32], strides = [1, 1]} : vector<8x128xf32> to vector<8x32xf32>
    %380 = arith.negf %379 : vector<8x32xf32>
    %381 = math.exp %380 : vector<8x32xf32>
    %cst_130 = arith.constant 1.000000e+00 : f32
    %382 = vector.broadcast %cst_130 : f32 to vector<8x32xf32>
    %383 = arith.addf %382, %381 : vector<8x32xf32>
    %384 = arith.divf %382, %383 : vector<8x32xf32>
    %385 = vector.extract_strided_slice %378 {offsets = [0, 32], sizes = [8, 32], strides = [1, 1]} : vector<8x128xf32> to vector<8x32xf32>
    %386 = arith.negf %385 : vector<8x32xf32>
    %387 = math.exp %386 : vector<8x32xf32>
    %cst_131 = arith.constant 1.000000e+00 : f32
    %388 = vector.broadcast %cst_131 : f32 to vector<8x32xf32>
    %389 = arith.addf %388, %387 : vector<8x32xf32>
    %390 = arith.divf %388, %389 : vector<8x32xf32>
    %391 = vector.extract_strided_slice %378 {offsets = [0, 64], sizes = [8, 32], strides = [1, 1]} : vector<8x128xf32> to vector<8x32xf32>
    %392 = math.tanh %391 : vector<8x32xf32>
    %393 = vector.extract_strided_slice %378 {offsets = [0, 96], sizes = [8, 32], strides = [1, 1]} : vector<8x128xf32> to vector<8x32xf32>
    %394 = arith.negf %393 : vector<8x32xf32>
    %395 = math.exp %394 : vector<8x32xf32>
    %cst_132 = arith.constant 1.000000e+00 : f32
    %396 = vector.broadcast %cst_132 : f32 to vector<8x32xf32>
    %397 = arith.addf %396, %395 : vector<8x32xf32>
    %398 = arith.divf %396, %397 : vector<8x32xf32>
    %399 = arith.mulf %390, %372 : vector<8x32xf32>
    %400 = arith.mulf %384, %392 : vector<8x32xf32>
    %401 = arith.addf %399, %400 : vector<8x32xf32>
    %402 = math.tanh %401 : vector<8x32xf32>
    %403 = arith.mulf %398, %402 : vector<8x32xf32>
    %c24_133 = arith.constant 24 : index
    %c0_134 = arith.constant 0 : index
    %404 = vector.load %arg22[%c24_133, %c0_134] : memref<64x32xf32, #tpu.memory_space<vmem>>, vector<8x32xf32>
    tpu.vector_store %arg22[%c24_133, %c0_134], %403 {strides = array<i32>} : memref<64x32xf32, #tpu.memory_space<vmem>>, vector<8x32xf32>,
    %c32_135 = arith.constant 32 : index
    %c0_136 = arith.constant 0 : index
    %405 = vector.load %arg21[%c32_135, %c0_136] : memref<64x128xf32, #tpu.memory_space<vmem>>, vector<8x128xf32>
    %cst_137 = arith.constant dense<0.000000e+00> : vector<8x128xf32>
    %406 = tpu.matmul %403, %286, %cst_137 {dimension_numbers = #tpu.dot_dimension_numbers<[1], [0], [0], [1], [0, 0, 1, 1], [], []>} : vector<8x32xf32>, vector<32x128xf32>, vector<8x128xf32> -> vector<8x128xf32>
    %407 = arith.addf %405, %406 : vector<8x128xf32>
    %408 = vector.extract_strided_slice %407 {offsets = [0, 0], sizes = [8, 32], strides = [1, 1]} : vector<8x128xf32> to vector<8x32xf32>
    %409 = arith.negf %408 : vector<8x32xf32>
    %410 = math.exp %409 : vector<8x32xf32>
    %cst_138 = arith.constant 1.000000e+00 : f32
    %411 = vector.broadcast %cst_138 : f32 to vector<8x32xf32>
    %412 = arith.addf %411, %410 : vector<8x32xf32>
    %413 = arith.divf %411, %412 : vector<8x32xf32>
    %414 = vector.extract_strided_slice %407 {offsets = [0, 32], sizes = [8, 32], strides = [1, 1]} : vector<8x128xf32> to vector<8x32xf32>
    %415 = arith.negf %414 : vector<8x32xf32>
    %416 = math.exp %415 : vector<8x32xf32>
    %cst_139 = arith.constant 1.000000e+00 : f32
    %417 = vector.broadcast %cst_139 : f32 to vector<8x32xf32>
    %418 = arith.addf %417, %416 : vector<8x32xf32>
    %419 = arith.divf %417, %418 : vector<8x32xf32>
    %420 = vector.extract_strided_slice %407 {offsets = [0, 64], sizes = [8, 32], strides = [1, 1]} : vector<8x128xf32> to vector<8x32xf32>
    %421 = math.tanh %420 : vector<8x32xf32>
    %422 = vector.extract_strided_slice %407 {offsets = [0, 96], sizes = [8, 32], strides = [1, 1]} : vector<8x128xf32> to vector<8x32xf32>
    %423 = arith.negf %422 : vector<8x32xf32>
    %424 = math.exp %423 : vector<8x32xf32>
    %cst_140 = arith.constant 1.000000e+00 : f32
    %425 = vector.broadcast %cst_140 : f32 to vector<8x32xf32>
    %426 = arith.addf %425, %424 : vector<8x32xf32>
    %427 = arith.divf %425, %426 : vector<8x32xf32>
    %428 = arith.mulf %419, %401 : vector<8x32xf32>
    %429 = arith.mulf %413, %421 : vector<8x32xf32>
    %430 = arith.addf %428, %429 : vector<8x32xf32>
    %431 = math.tanh %430 : vector<8x32xf32>
    %432 = arith.mulf %427, %431 : vector<8x32xf32>
    %c32_141 = arith.constant 32 : index
    %c0_142 = arith.constant 0 : index
    %433 = vector.load %arg22[%c32_141, %c0_142] : memref<64x32xf32, #tpu.memory_space<vmem>>, vector<8x32xf32>
    tpu.vector_store %arg22[%c32_141, %c0_142], %432 {strides = array<i32>} : memref<64x32xf32, #tpu.memory_space<vmem>>, vector<8x32xf32>,
    %c40_143 = arith.constant 40 : index
    %c0_144 = arith.constant 0 : index
    %434 = vector.load %arg21[%c40_143, %c0_144] : memref<64x128xf32, #tpu.memory_space<vmem>>, vector<8x128xf32>
    %cst_145 = arith.constant dense<0.000000e+00> : vector<8x128xf32>
    %435 = tpu.matmul %432, %286, %cst_145 {dimension_numbers = #tpu.dot_dimension_numbers<[1], [0], [0], [1], [0, 0, 1, 1], [], []>} : vector<8x32xf32>, vector<32x128xf32>, vector<8x128xf32> -> vector<8x128xf32>
    %436 = arith.addf %434, %435 : vector<8x128xf32>
    %437 = vector.extract_strided_slice %436 {offsets = [0, 0], sizes = [8, 32], strides = [1, 1]} : vector<8x128xf32> to vector<8x32xf32>
    %438 = arith.negf %437 : vector<8x32xf32>
    %439 = math.exp %438 : vector<8x32xf32>
    %cst_146 = arith.constant 1.000000e+00 : f32
    %440 = vector.broadcast %cst_146 : f32 to vector<8x32xf32>
    %441 = arith.addf %440, %439 : vector<8x32xf32>
    %442 = arith.divf %440, %441 : vector<8x32xf32>
    %443 = vector.extract_strided_slice %436 {offsets = [0, 32], sizes = [8, 32], strides = [1, 1]} : vector<8x128xf32> to vector<8x32xf32>
    %444 = arith.negf %443 : vector<8x32xf32>
    %445 = math.exp %444 : vector<8x32xf32>
    %cst_147 = arith.constant 1.000000e+00 : f32
    %446 = vector.broadcast %cst_147 : f32 to vector<8x32xf32>
    %447 = arith.addf %446, %445 : vector<8x32xf32>
    %448 = arith.divf %446, %447 : vector<8x32xf32>
    %449 = vector.extract_strided_slice %436 {offsets = [0, 64], sizes = [8, 32], strides = [1, 1]} : vector<8x128xf32> to vector<8x32xf32>
    %450 = math.tanh %449 : vector<8x32xf32>
    %451 = vector.extract_strided_slice %436 {offsets = [0, 96], sizes = [8, 32], strides = [1, 1]} : vector<8x128xf32> to vector<8x32xf32>
    %452 = arith.negf %451 : vector<8x32xf32>
    %453 = math.exp %452 : vector<8x32xf32>
    %cst_148 = arith.constant 1.000000e+00 : f32
    %454 = vector.broadcast %cst_148 : f32 to vector<8x32xf32>
    %455 = arith.addf %454, %453 : vector<8x32xf32>
    %456 = arith.divf %454, %455 : vector<8x32xf32>
    %457 = arith.mulf %448, %430 : vector<8x32xf32>
    %458 = arith.mulf %442, %450 : vector<8x32xf32>
    %459 = arith.addf %457, %458 : vector<8x32xf32>
    %460 = math.tanh %459 : vector<8x32xf32>
    %461 = arith.mulf %456, %460 : vector<8x32xf32>
    %c40_149 = arith.constant 40 : index
    %c0_150 = arith.constant 0 : index
    %462 = vector.load %arg22[%c40_149, %c0_150] : memref<64x32xf32, #tpu.memory_space<vmem>>, vector<8x32xf32>
    tpu.vector_store %arg22[%c40_149, %c0_150], %461 {strides = array<i32>} : memref<64x32xf32, #tpu.memory_space<vmem>>, vector<8x32xf32>,
    %c48_151 = arith.constant 48 : index
    %c0_152 = arith.constant 0 : index
    %463 = vector.load %arg21[%c48_151, %c0_152] : memref<64x128xf32, #tpu.memory_space<vmem>>, vector<8x128xf32>
    %cst_153 = arith.constant dense<0.000000e+00> : vector<8x128xf32>
    %464 = tpu.matmul %461, %286, %cst_153 {dimension_numbers = #tpu.dot_dimension_numbers<[1], [0], [0], [1], [0, 0, 1, 1], [], []>} : vector<8x32xf32>, vector<32x128xf32>, vector<8x128xf32> -> vector<8x128xf32>
    %465 = arith.addf %463, %464 : vector<8x128xf32>
    %466 = vector.extract_strided_slice %465 {offsets = [0, 0], sizes = [8, 32], strides = [1, 1]} : vector<8x128xf32> to vector<8x32xf32>
    %467 = arith.negf %466 : vector<8x32xf32>
    %468 = math.exp %467 : vector<8x32xf32>
    %cst_154 = arith.constant 1.000000e+00 : f32
    %469 = vector.broadcast %cst_154 : f32 to vector<8x32xf32>
    %470 = arith.addf %469, %468 : vector<8x32xf32>
    %471 = arith.divf %469, %470 : vector<8x32xf32>
    %472 = vector.extract_strided_slice %465 {offsets = [0, 32], sizes = [8, 32], strides = [1, 1]} : vector<8x128xf32> to vector<8x32xf32>
    %473 = arith.negf %472 : vector<8x32xf32>
    %474 = math.exp %473 : vector<8x32xf32>
    %cst_155 = arith.constant 1.000000e+00 : f32
    %475 = vector.broadcast %cst_155 : f32 to vector<8x32xf32>
    %476 = arith.addf %475, %474 : vector<8x32xf32>
    %477 = arith.divf %475, %476 : vector<8x32xf32>
    %478 = vector.extract_strided_slice %465 {offsets = [0, 64], sizes = [8, 32], strides = [1, 1]} : vector<8x128xf32> to vector<8x32xf32>
    %479 = math.tanh %478 : vector<8x32xf32>
    %480 = vector.extract_strided_slice %465 {offsets = [0, 96], sizes = [8, 32], strides = [1, 1]} : vector<8x128xf32> to vector<8x32xf32>
    %481 = arith.negf %480 : vector<8x32xf32>
    %482 = math.exp %481 : vector<8x32xf32>
    %cst_156 = arith.constant 1.000000e+00 : f32
    %483 = vector.broadcast %cst_156 : f32 to vector<8x32xf32>
    %484 = arith.addf %483, %482 : vector<8x32xf32>
    %485 = arith.divf %483, %484 : vector<8x32xf32>
    %486 = arith.mulf %477, %459 : vector<8x32xf32>
    %487 = arith.mulf %471, %479 : vector<8x32xf32>
    %488 = arith.addf %486, %487 : vector<8x32xf32>
    %489 = math.tanh %488 : vector<8x32xf32>
    %490 = arith.mulf %485, %489 : vector<8x32xf32>
    %c48_157 = arith.constant 48 : index
    %c0_158 = arith.constant 0 : index
    %491 = vector.load %arg22[%c48_157, %c0_158] : memref<64x32xf32, #tpu.memory_space<vmem>>, vector<8x32xf32>
    tpu.vector_store %arg22[%c48_157, %c0_158], %490 {strides = array<i32>} : memref<64x32xf32, #tpu.memory_space<vmem>>, vector<8x32xf32>,
    %c56_159 = arith.constant 56 : index
    %c0_160 = arith.constant 0 : index
    %492 = vector.load %arg21[%c56_159, %c0_160] : memref<64x128xf32, #tpu.memory_space<vmem>>, vector<8x128xf32>
    %cst_161 = arith.constant dense<0.000000e+00> : vector<8x128xf32>
    %493 = tpu.matmul %490, %286, %cst_161 {dimension_numbers = #tpu.dot_dimension_numbers<[1], [0], [0], [1], [0, 0, 1, 1], [], []>} : vector<8x32xf32>, vector<32x128xf32>, vector<8x128xf32> -> vector<8x128xf32>
    %494 = arith.addf %492, %493 : vector<8x128xf32>
    %495 = vector.extract_strided_slice %494 {offsets = [0, 0], sizes = [8, 32], strides = [1, 1]} : vector<8x128xf32> to vector<8x32xf32>
    %496 = arith.negf %495 : vector<8x32xf32>
    %497 = math.exp %496 : vector<8x32xf32>
    %cst_162 = arith.constant 1.000000e+00 : f32
    %498 = vector.broadcast %cst_162 : f32 to vector<8x32xf32>
    %499 = arith.addf %498, %497 : vector<8x32xf32>
    %500 = arith.divf %498, %499 : vector<8x32xf32>
    %501 = vector.extract_strided_slice %494 {offsets = [0, 32], sizes = [8, 32], strides = [1, 1]} : vector<8x128xf32> to vector<8x32xf32>
    %502 = arith.negf %501 : vector<8x32xf32>
    %503 = math.exp %502 : vector<8x32xf32>
    %cst_163 = arith.constant 1.000000e+00 : f32
    %504 = vector.broadcast %cst_163 : f32 to vector<8x32xf32>
    %505 = arith.addf %504, %503 : vector<8x32xf32>
    %506 = arith.divf %504, %505 : vector<8x32xf32>
    %507 = vector.extract_strided_slice %494 {offsets = [0, 64], sizes = [8, 32], strides = [1, 1]} : vector<8x128xf32> to vector<8x32xf32>
    %508 = math.tanh %507 : vector<8x32xf32>
    %509 = vector.extract_strided_slice %494 {offsets = [0, 96], sizes = [8, 32], strides = [1, 1]} : vector<8x128xf32> to vector<8x32xf32>
    %510 = arith.negf %509 : vector<8x32xf32>
    %511 = math.exp %510 : vector<8x32xf32>
    %cst_164 = arith.constant 1.000000e+00 : f32
    %512 = vector.broadcast %cst_164 : f32 to vector<8x32xf32>
    %513 = arith.addf %512, %511 : vector<8x32xf32>
    %514 = arith.divf %512, %513 : vector<8x32xf32>
    %515 = arith.mulf %506, %488 : vector<8x32xf32>
    %516 = arith.mulf %500, %508 : vector<8x32xf32>
    %517 = arith.addf %515, %516 : vector<8x32xf32>
    %518 = math.tanh %517 : vector<8x32xf32>
    %519 = arith.mulf %514, %518 : vector<8x32xf32>
    %c56_165 = arith.constant 56 : index
    %c0_166 = arith.constant 0 : index
    %520 = vector.load %arg22[%c56_165, %c0_166] : memref<64x32xf32, #tpu.memory_space<vmem>>, vector<8x32xf32>
    tpu.vector_store %arg22[%c56_165, %c0_166], %519 {strides = array<i32>} : memref<64x32xf32, #tpu.memory_space<vmem>>, vector<8x32xf32>,
    %c1 = arith.constant 1 : index
    %c0_167 = arith.constant 0 : index
    %c0_168 = arith.constant 0 : index
    %521 = vector.load %arg19[%c1, %c0_167, %c0_168] : memref<2x8x32xf32, #tpu.memory_space<vmem>>, vector<1x8x32xf32>
    %522 = vector.shape_cast %521 : vector<1x8x32xf32> to vector<8x32xf32>
    %523 = vector.shape_cast %519 : vector<8x32xf32> to vector<1x8x32xf32>
    tpu.vector_store %arg19[%c1, %c0_167, %c0_168], %523 {strides = array<i32>} : memref<2x8x32xf32, #tpu.memory_space<vmem>>, vector<1x8x32xf32>,
    %c1_169 = arith.constant 1 : index
    %c0_170 = arith.constant 0 : index
    %c0_171 = arith.constant 0 : index
    %524 = vector.load %arg20[%c1_169, %c0_170, %c0_171] : memref<2x8x32xf32, #tpu.memory_space<vmem>>, vector<1x8x32xf32>
    %525 = vector.shape_cast %524 : vector<1x8x32xf32> to vector<8x32xf32>
    %526 = vector.shape_cast %517 : vector<8x32xf32> to vector<1x8x32xf32>
    tpu.vector_store %arg20[%c1_169, %c0_170, %c0_171], %526 {strides = array<i32>} : memref<2x8x32xf32, #tpu.memory_space<vmem>>, vector<1x8x32xf32>,
    %c0_172 = arith.constant 0 : index
    %c0_173 = arith.constant 0 : index
    %527 = vector.load %arg22[%c0_172, %c0_173] : memref<64x32xf32, #tpu.memory_space<vmem>>, vector<64x32xf32>
    %c0_174 = arith.constant 0 : index
    %c0_175 = arith.constant 0 : index
    %528 = vector.load %arg14[%c0_174, %c0_175] : memref<32x32xf32, #tpu.memory_space<vmem>>, vector<32x32xf32>
    %cst_176 = arith.constant dense<0.000000e+00> : vector<64x32xf32>
    %529 = tpu.matmul %527, %528, %cst_176 {dimension_numbers = #tpu.dot_dimension_numbers<[1], [0], [0], [1], [0, 0, 1, 1], [], []>} : vector<64x32xf32>, vector<32x32xf32>, vector<64x32xf32> -> vector<64x32xf32>
    %c0_177 = arith.constant 0 : index
    %c0_178 = arith.constant 0 : index
    %530 = vector.load %arg15[%c0_177, %c0_178] : memref<1x32xf32, #tpu.memory_space<vmem>>, vector<1x32xf32>
    %531 = vector.broadcast %530 : vector<1x32xf32> to vector<64x32xf32>
    %532 = arith.addf %529, %531 : vector<64x32xf32>
    %c0_179 = arith.constant 0 : index
    %c0_180 = arith.constant 0 : index
    %533 = vector.load %arg16[%c0_179, %c0_180] : memref<1x32xf32, #tpu.memory_space<vmem>>, vector<1x32xf32>
    %c0_181 = arith.constant 0 : index
    %c0_182 = arith.constant 0 : index
    %534 = vector.load %arg17[%c0_181, %c0_182] : memref<1x32xf32, #tpu.memory_space<vmem>>, vector<1x32xf32>
    %cst_183 = arith.constant dense<0.000000e+00> : vector<64xf32>
    %535 = vector.multi_reduction <add>, %532, %cst_183 [1] : vector<64x32xf32> to vector<64xf32>
    %536 = vector.shape_cast %535 : vector<64xf32> to vector<64x1xf32>
    %cst_184 = arith.constant 3.200000e+01 : f32
    %537 = vector.broadcast %cst_184 : f32 to vector<64x1xf32>
    %538 = arith.divf %536, %537 : vector<64x1xf32>
    %539 = vector.broadcast %538 : vector<64x1xf32> to vector<64x32xf32>
    %540 = arith.subf %532, %539 : vector<64x32xf32>
    %541 = arith.mulf %540, %540 : vector<64x32xf32>
    %cst_185 = arith.constant dense<0.000000e+00> : vector<64xf32>
    %542 = vector.multi_reduction <add>, %541, %cst_185 [1] : vector<64x32xf32> to vector<64xf32>
    %543 = vector.shape_cast %542 : vector<64xf32> to vector<64x1xf32>
    %cst_186 = arith.constant 3.200000e+01 : f32
    %544 = vector.broadcast %cst_186 : f32 to vector<64x1xf32>
    %545 = arith.divf %543, %544 : vector<64x1xf32>
    %546 = vector.broadcast %538 : vector<64x1xf32> to vector<64x32xf32>
    %547 = arith.subf %532, %546 : vector<64x32xf32>
    %cst_187 = arith.constant 9.99999974E-6 : f32
    %548 = vector.broadcast %cst_187 : f32 to vector<64x1xf32>
    %549 = arith.addf %545, %548 : vector<64x1xf32>
    %550 = math.rsqrt %549 : vector<64x1xf32>
    %551 = vector.broadcast %550 : vector<64x1xf32> to vector<64x32xf32>
    %552 = arith.mulf %547, %551 : vector<64x32xf32>
    %553 = vector.broadcast %533 : vector<1x32xf32> to vector<64x32xf32>
    %554 = arith.mulf %552, %553 : vector<64x32xf32>
    %555 = vector.broadcast %534 : vector<1x32xf32> to vector<64x32xf32>
    %556 = arith.addf %554, %555 : vector<64x32xf32>
    %c0_188 = arith.constant 0 : index
    %c0_189 = arith.constant 0 : index
    %557 = vector.load %arg18[%c0_188, %c0_189] : memref<64x32xf32, #tpu.memory_space<vmem>>, vector<64x32xf32>
    tpu.vector_store %arg18[%c0_188, %c0_189], %556 {strides = array<i32>} : memref<64x32xf32, #tpu.memory_space<vmem>>, vector<64x32xf32>,
    return
  }
}

</mosaic_0001>

<bundles_post_ra>
// kernel: tpu_custom_call.1
= control target key start
LH: loop header
LB: loop body
LE: loop exit
PB: predicated region body
PF: predicated region fallthrough
CT: control target
= control target key end

     0   :  { %s4602_s0 = inlined_call_operand.vmem [shape: s32[64,1], index: 0, kind: input, shape index: {}]   ;;  %s4603_s1 = inlined_call_operand.hbm [shape: f32[16,32], index: 1, kind: input, shape index: {}]   ;;  %s4604_s2 = inlined_call_operand.vmem [shape: f32[1,32], index: 2, kind: input, shape index: {}]   ;;  %s4605_s3 = inlined_call_operand.vmem [shape: f32[1,32], index: 3, kind: input, shape index: {}]   ;;  %s4606_s4 = inlined_call_operand.vmem [shape: f32[32,128], index: 4, kind: input, shape index: {}]   ;;  %s4607_s5 = inlined_call_operand.hbm [shape: f32[1,128], index: 5, kind: input, shape index: {}]   ;;  %s4608_s6 = inlined_call_operand.vmem [shape: f32[32,128], index: 6, kind: input, shape index: {}]   ;;  %s4609_s7 = inlined_call_operand.hbm [shape: f32[8,32], index: 7, kind: input, shape index: {}]   ;;  %s4610_s8 = inlined_call_operand.hbm [shape: f32[8,32], index: 8, kind: input, shape index: {}]   ;;  %s4611_s9 = inlined_call_operand.vmem [shape: f32[32,128], index: 9, kind: input, shape index: {}]   ;;  %s4612_s10 = inlined_call_operand.hbm [shape: f32[1,128], index: 10, kind: input, shape index: {}]   ;;  %s4613_s11 = inlined_call_operand.hbm [shape: f32[32,128], index: 11, kind: input, shape index: {}]   ;;  %s4614_s12 = inlined_call_operand.vmem [shape: f32[8,32], index: 12, kind: input, shape index: {}]   ;;  %s4615_s13 = inlined_call_operand.vmem [shape: f32[8,32], index: 13, kind: input, shape index: {}]   ;;  %s4616_s14 = inlined_call_operand.hbm [shape: f32[32,32], index: 14, kind: input, shape index: {}]   ;;  %s4617_s15 = inlined_call_operand.vmem [shape: f32[1,32], index: 15, kind: input, shape index: {}]   ;;  %s4618_s16 = inlined_call_operand.vmem [shape: f32[1,32], index: 16, kind: input, shape index: {}]   ;;  %s4619_s17 = inlined_call_operand.vmem [shape: f32[1,32], index: 17, kind: input, shape index: {}]   ;;  %s4620_s18 = inlined_call_operand.vmem [shape: f32[64,32], index: 18, kind: output, shape index: {0}]   ;;  %s4621_s19 = inlined_call_operand.hbm [shape: f32[2,8,32], index: 19, kind: output, shape index: {1}]   ;;  %s4622_s20 = inlined_call_operand.hbm [shape: f32[2,8,32], index: 20, kind: output, shape index: {2}]  }
   0x1   :  { %4626 = sst [smem:[#allocation25_spill]] %s4602_s0 }
   0x2   :  { %4627 = sst [smem:[#allocation26_spill]] %s4603_s1 }
   0x3   :  { %4628 = sst [smem:[#allocation27_spill]] %s4604_s2 }
   0x4   :  { %4629 = sst [smem:[#allocation28_spill]] %s4605_s3 }
   0x5   :  { %4630 = sst [smem:[#allocation29_spill]] %s4606_s4 }
   0x6   :  { %26 = vsyncpa [#allocation5], 0 }
   0x7   :  { %27 = vsyncpa [#allocation8], 0 }
   0x8   :  { %28 = vsyncpa [#allocation11], 0 }
   0x9   :  { %29 = vsyncpa [#allocation14], 0 }
   0xa   :  { %30 = vsyncpa [#allocation6], 0 }
   0xb   :  { %31 = vsyncpa [#allocation18], 0  ;;  %s3768_s1 = smov [#allocation7]   ;;  %s3769_s23 = smov [#allocation10]  }
   0xc   :  { %s58_s22 = sshll.u32 %s3768_s1, 4  ;;  %s80_s24 = sshll.u32 %s3769_s23, 4  ;;  %s59_s22 = int_to_ptr.vmem [resolvable:$true] %s58_s22  ;;  %s81_s24 = int_to_ptr.vmem [resolvable:$true] %s80_s24 }
   0xd   :  { %s3558_s3 = scalar_lea.hbm %s4607_s5, 16 }
   0xe   :  { %p3559_p0 = scmp.ne.s32.totalorder %s4607_s5, %s3558_s3  ;;  %p3562_p1 = scmp.lt.u32.totalorder %s3558_s3, %s4607_s5 }
  0x10   :  { %p3564_p2 = pnand %p3562_p1, %p3559_p0 }
  0x12   :  { %3567 = shalt.err (!%p3564_p2)
}
  0x13   :  { %s3568_s29 = scalar_lea.vmem %s59_s22, 16  ;;  %s3572_s30 = scalar_lea.vmem %s59_s22, 32 }
  0x14   :  { %p3569_p3 = scmp.ne.s32.totalorder %s59_s22, %s3568_s29  ;;  %p3573_p4 = scmp.lt.s32.totalorder %s59_s22, %s59_s22 }
  0x15   :  { %p3574_p5 = scmp.lt.s32.totalorder %s3572_s30, %s3568_s29 }
  0x17   :  { %p3575_p6 = por %p3574_p5, %p3573_p4 }
  0x19   :  { %p3576_p7 = pnand %p3575_p6, %p3569_p3 }
  0x1b   :  { %3579 = shalt.err (!%p3576_p7)
}
  0x1c   :  { %61 = dma.hbm_to_vmem [thread:$0]  %s4607_s5, 16, %s59_s22, [#allocation8]  }
  0x1d   :  { %s3580_s2 = scalar_lea.hbm %s4610_s8, 128 }
  0x1e   :  { %p3581_p8 = scmp.ne.s32.totalorder %s4610_s8, %s3580_s2  ;;  %p3584_p9 = scmp.lt.u32.totalorder %s3580_s2, %s4610_s8 }
  0x20   :  { %p3586_p10 = pnand %p3584_p9, %p3581_p8 }
  0x22   :  { %3589 = shalt.err (!%p3586_p10)
}
  0x23   :  { %s3590_s28 = scalar_lea.vmem %s81_s24, 128  ;;  %p3595_p12 = scmp.lt.s32.totalorder %s81_s24, %s81_s24 }
  0x24   :  { %p3591_p11 = scmp.ne.s32.totalorder %s81_s24, %s3590_s28  ;;  %p3596_p13 = scmp.lt.s32.totalorder %s3590_s28, %s3590_s28 }
  0x26   :  { %p3597_p0 = por %p3596_p13, %p3595_p12 }
  0x28   :  { %p3598_p1 = pnand %p3597_p0, %p3591_p11 }
  0x2a   :  { %3601 = shalt.err (!%p3598_p1)
}
  0x2b   :  { %83 = dma.hbm_to_vmem [thread:$0]  %s4610_s8, 128, %s81_s24, [#allocation11]  }
  0x2c   :  { %s3770_s4 = smov [#allocation13]   ;;  %s3771_s30 = smov [#allocation4]  }
  0x2d   :  { %s101_s29 = sshll.u32 %s3770_s4, 4  ;;  %s39_s0 = sshll.u32 %s3771_s30, 4  ;;  %s102_s29 = int_to_ptr.vmem [resolvable:$true] %s101_s29  ;;  %s3915_s0 = int_to_ptr.vmem [resolvable:$true] %s39_s0 }
  0x2e   :  { %s3602_s23 = scalar_lea.hbm %s4613_s11, 512 }
  0x2f   :  { %p3603_p2 = scmp.ne.s32.totalorder %s4613_s11, %s3602_s23  ;;  %p3606_p3 = scmp.lt.u32.totalorder %s3602_s23, %s4613_s11 }
  0x31   :  { %p3608_p4 = pnand %p3606_p3, %p3603_p2 }
  0x33   :  { %3611 = shalt.err (!%p3608_p4)
}
  0x34   :  { %s3612_s8 = scalar_lea.vmem %s102_s29, 512  ;;  %p3617_p6 = scmp.lt.s32.totalorder %s102_s29, %s102_s29 }
  0x35   :  { %p3613_p5 = scmp.ne.s32.totalorder %s102_s29, %s3612_s8  ;;  %p3618_p7 = scmp.lt.s32.totalorder %s3612_s8, %s3612_s8 }
  0x37   :  { %p3619_p8 = por %p3618_p7, %p3617_p6 }
  0x39   :  { %p3620_p9 = pnand %p3619_p8, %p3613_p5 }
  0x3b   :  { %3623 = shalt.err (!%p3620_p9)
}
  0x3c   :  { %s3772_s24 = smov 128   ;;  %s3773_s27 = smov 8  }
  0x3d   :  { %107 = dma.hbm_to_vmem [thread:$0]  %s4613_s11, 512, %s102_s29, [#allocation14], %s3772_s24, %s3772_s24, %s3773_s27  }
  0x3e   :  { %s4631_s30 = sld [smem:[#allocation26_spill]] }
  0x44   :  { %s3624_s21 = scalar_lea.hbm %s4631_s30, 256 }
  0x45   :  { %p3625_p10 = scmp.ne.s32.totalorder %s4631_s30, %s3624_s21  ;;  %p3628_p11 = scmp.lt.u32.totalorder %s3624_s21, %s4631_s30 }
  0x47   :  { %p3630_p12 = pnand %p3628_p11, %p3625_p10 }
  0x49   :  { %3633 = shalt.err (!%p3630_p12)
}
  0x4a   :  { %s3634_s3 = scalar_lea.vmem %s3915_s0, 256  ;;  %p3639_p0 = scmp.lt.s32.totalorder %s3915_s0, %s3915_s0 }
  0x4b   :  { %p3635_p13 = scmp.ne.s32.totalorder %s3915_s0, %s3634_s3  ;;  %p3640_p1 = scmp.lt.s32.totalorder %s3634_s3, %s3634_s3 }
  0x4d   :  { %p3641_p2 = por %p3640_p1, %p3639_p0 }
  0x4f   :  { %p3642_p3 = pnand %p3641_p2, %p3635_p13 }
  0x51   :  { %3645 = shalt.err (!%p3642_p3)
}
  0x52   :  { %45 = dma.hbm_to_vmem [thread:$0]  %s4631_s30, 256, %s3915_s0, [#allocation5], %s3772_s24, %s3772_s24, %s3773_s27  }
  0x53   :  { %s3774_s26 = smov [#allocation9]   ;;  %s3775_s28 = smov [#allocation12]  }
  0x54   :  { %s70_s8 = sshll.u32 %s3774_s26, 4  ;;  %s92_s5 = sshll.u32 %s3775_s28, 4  ;;  %s71_s8 = int_to_ptr.vmem [resolvable:$true] %s70_s8  ;;  %s93_s5 = int_to_ptr.vmem [resolvable:$true] %s92_s5 }
  0x55   :  { %s3646_s21 = scalar_lea.hbm %s4609_s7, 128 }
  0x56   :  { %p3647_p4 = scmp.ne.s32.totalorder %s4609_s7, %s3646_s21  ;;  %p3650_p5 = scmp.lt.u32.totalorder %s3646_s21, %s4609_s7 }
  0x58   :  { %p3652_p6 = pnand %p3650_p5, %p3647_p4 }
  0x5a   :  { %3655 = shalt.err (!%p3652_p6)
}
  0x5b   :  { %s3656_s0 = scalar_lea.vmem %s71_s8, 128  ;;  %p3661_p8 = scmp.lt.s32.totalorder %s71_s8, %s71_s8 }
  0x5c   :  { %p3657_p7 = scmp.ne.s32.totalorder %s71_s8, %s3656_s0  ;;  %p3662_p9 = scmp.lt.s32.totalorder %s3656_s0, %s3656_s0 }
  0x5e   :  { %p3663_p10 = por %p3662_p9, %p3661_p8 }
  0x60   :  { %p3664_p11 = pnand %p3663_p10, %p3657_p7 }
  0x62   :  { %3667 = shalt.err (!%p3664_p11)
}
  0x63   :  { %73 = dma.hbm_to_vmem [thread:$0]  %s4609_s7, 128, %s71_s8, [#allocation8]  }
  0x64   :  { %s3668_s26 = scalar_lea.hbm %s4612_s10, 16 }
  0x65   :  { %p3669_p12 = scmp.ne.s32.totalorder %s4612_s10, %s3668_s26  ;;  %p3672_p13 = scmp.lt.u32.totalorder %s3668_s26, %s4612_s10 }
  0x67   :  { %p3674_p0 = pnand %p3672_p13, %p3669_p12 }
  0x69   :  { %3677 = shalt.err (!%p3674_p0)
}
  0x6a   :  { %s3678_s1 = scalar_lea.vmem %s93_s5, 16  ;;  %s3682_s23 = scalar_lea.vmem %s93_s5, 32 }
  0x6b   :  { %p3679_p1 = scmp.ne.s32.totalorder %s93_s5, %s3678_s1  ;;  %p3683_p2 = scmp.lt.s32.totalorder %s93_s5, %s93_s5 }
  0x6c   :  { %p3684_p3 = scmp.lt.s32.totalorder %s3682_s23, %s3678_s1 }
  0x6e   :  { %p3685_p4 = por %p3684_p3, %p3683_p2 }
  0x70   :  { %p3686_p5 = pnand %p3685_p4, %p3679_p1 }
  0x72   :  { %3689 = shalt.err (!%p3686_p5)
}
  0x73   :  { %95 = dma.hbm_to_vmem [thread:$0]  %s4612_s10, 16, %s93_s5, [#allocation11]  }
  0x74   :  { %s3776_s2 = smov [#allocation15]   ;;  %s3690_s3 = scalar_lea.hbm %s4616_s14, 512 }
  0x75   :  { %s117_s25 = sshll.u32 %s3776_s2, 4  ;;  %p3691_p6 = scmp.ne.s32.totalorder %s4616_s14, %s3690_s3  ;;  %s118_s25 = int_to_ptr.vmem [resolvable:$true] %s117_s25 }
  0x76   :  { %p3694_p7 = scmp.lt.u32.totalorder %s3690_s3, %s4616_s14 }
  0x78   :  { %p3696_p8 = pnand %p3694_p7, %p3691_p6 }
  0x7a   :  { %3699 = shalt.err (!%p3696_p8)
}
  0x7b   :  { %s3700_s22 = scalar_lea.vmem %s118_s25, 512  ;;  %p3705_p10 = scmp.lt.s32.totalorder %s118_s25, %s118_s25 }
  0x7c   :  { %p3701_p9 = scmp.ne.s32.totalorder %s118_s25, %s3700_s22  ;;  %p3706_p11 = scmp.lt.s32.totalorder %s3700_s22, %s3700_s22 }
  0x7e   :  { %p3707_p12 = por %p3706_p11, %p3705_p10 }
  0x80   :  { %p3708_p13 = pnand %p3707_p12, %p3701_p9 }
  0x82   :  { %3711 = shalt.err (!%p3708_p13)
}
  0x83   :  { %123 = dma.hbm_to_vmem [thread:$0]  %s4616_s14, 512, %s118_s25, [#allocation14], %s3772_s24, %s3772_s24, %s3773_s27  }
  0x84   :  { %3756 = dma.done.wait [#allocation5], 256  }
  0x85   :  { %3757 = vsyncadd [#allocation5], 4294967040 }
  0x86   :  { %3758 = dma.done.wait [#allocation8], 144  }
  0x87   :  { %3759 = vsyncadd [#allocation8], 4294967152 }
  0x88   :  { %3760 = dma.done.wait [#allocation11], 144  }
  0x89   :  { %3761 = vsyncadd [#allocation11], 4294967152 }
  0x8a   :  { %3762 = dma.done.wait [#allocation14], 1024  }
  0x8b   :  { %3763 = vsyncadd [#allocation14], 4294966272  ;;  %v3777_v0 = vmov 0   ;;  %s4632_s1 = sld [smem:[#allocation25_spill]]  ;;  %v209_v2 = vld [vmem:[#allocation4] sm:$0xff]  ;;  %v210_v3 = vld [vmem:[#allocation4 + $0x8] sm:$0xff]  ;;  %v159_v6 = vlaneseq }
  0x8c   :  { %3396 = vset.pattern.permute.xlu0 %v3777_v0  ;;  %3397 = vset.pattern.permute.xlu1 %v3777_v0  ;;  %v3252_v5 = vpack.c.bf16 %v210_v3, %v209_v2  ;;  %vm211_vm0 = vcmask 130048   ;;  %v3778_v9 = vmov 0.0   ;;  %vm343_vm3 = vcmask 261120   ;;  %s4633_s4 = sld [smem:[#allocation29_spill]]  ;;  %v625_v44 = vld [vmem:[%s4608_s6] sm:$0xff]  ;;  %v626_v45 = vld [vmem:[%s4608_s6 + $0x8] sm:$0xff] }
  0x8d   :  { %v3997_v7 = vand.u32 127, %v159_v6  ;;  %v4065_v48 = vpack.c.bf16 %v626_v45, %v625_v44  ;;  %v3779_v49 = vmov 0.0|0.0   ;;  %v627_v51 = vld [vmem:[%s4608_s6 + $0x10] sm:$0xff]  ;;  %v628_v52 = vld [vmem:[%s4608_s6 + $0x18] sm:$0xff]  ;;  %s3780_s28 = smov 32   ;;  %vm3781_vm10 = vmmov 0  }
  0x8e   :  { %3253 = vmatprep.subr.bf16.mxu0 %v3252_v5  ;;  %3376 = vmatprep.subr.bf16.mxu1 %v3252_v5  ;;  %v4076_v53 = vpack.c.bf16 %v628_v52, %v627_v51  ;;  %v630_v54 = vld [vmem:[#allocation10] sm:$0xff]  ;;  %s4634_s10 = sld [smem:[#allocation27_spill]]  ;;  %s4635_s21 = sld [smem:[#allocation28_spill]] }
  0x8f   :  { %3255 = vmatpush3.bf16.msra.mxu0 %v3252_v5  ;;  %3377 = vmatpush3.bf16.msra.mxu1 %v3252_v5  ;;  %s3782_s23 = smov 64   ;;  %s3783_s22 = smov 96  }
  0x90   :  { %3264 = vmatprep.subr.bf16.mxu0 %v3779_v49  ;;  %s3784_s25 = smov [#allocation16]  }
  0x91   :  { %v151_v1 = vld [vmem:[%s4632_s1] sm:$0xff]  ;;  %v152_v4 = vld [vmem:[%s4632_s1 + $0x8] sm:$0xff]  ;;  %v157_v19 = vld [vmem:[%s4632_s1 + $0x30] sm:$0xff]  ;;  %s2762_s0 = sshll.u32 %s3784_s25, 4  ;;  %s2763_s0 = int_to_ptr.vmem [resolvable:$true] %s2762_s0 }
  0x92   :  { %162 = vperm.xlu0 %3396, %v151_v1   ;;  %v155_v17 = vld [vmem:[%s4632_s1 + $0x20] sm:$0xff]  ;;  %v156_v18 = vld [vmem:[%s4632_s1 + $0x28] sm:$0xff]  ;;  %v158_v20 = vld [vmem:[%s4632_s1 + $0x38] sm:$0xff]  ;;  %s3712_s30 = scalar_lea.vmem %s2763_s0, 256  ;;  %p3717_p1 = scmp.lt.s32.totalorder %s2763_s0, %s2763_s0 }
  0x93   :  { %v154_v39 = vld [vmem:[%s4632_s1 + $0x18] sm:$0xff]  ;;  %v153_v40 = vld [vmem:[%s4632_s1 + $0x10] sm:$0xff]  ;;  %v477_v41 = vld [vmem:[%s4633_s4] sm:$0xff]  ;;  %p3713_p0 = scmp.ne.s32.totalorder %s2763_s0, %s3712_s30  ;;  %p3718_p2 = scmp.lt.s32.totalorder %s3712_s30, %s3712_s30 }
  0x94   :  { %v478_v42 = vld [vmem:[%s4633_s4 + $0x8] sm:$0xff]  ;;  %v479_v46 = vld [vmem:[%s4633_s4 + $0x10] sm:$0xff]  ;;  %v480_v47 = vld [vmem:[%s4633_s4 + $0x18] sm:$0xff] }
  0x95   :  { %v3256_v43 = vpack.c.bf16 %v478_v42, %v477_v41  ;;  %v3260_v50 = vpack.c.bf16 %v480_v47, %v479_v46  ;;  %v629_v1 = vld [vmem:[#allocation9] sm:$0xff]  ;;  %v4093_v3 = vld [vmem:[%s4634_s10] ss:$0 sm:$0xff]  ;;  %p3719_p3 = por %p3718_p2, %p3717_p1 }
  0x96   :  { %165 = vperm.xlu0 %3396, %v152_v4   ;;  %v4100_v5 = vld [vmem:[%s4635_s21] ss:$0 sm:$0xff] }
  0x97   :  { %3257 = vmatprep.subr.bf16.mxu1 %v3256_v43  ;;  %p3720_p4 = pnand %p3719_p3, %p3713_p0 }
 0x111   :  { %v163_v8 = vpop.permute.xlu0 %162 }
 0x112   :  { %vm185_vm1 = vcmp.eq.s32.totalorder %v3997_v7, %v163_v8 }
 0x113   :  { %v2795_v10 = vsel %vm185_vm1, 1.0, %v3778_v9 }
 0x114   :  { %3004 = vmatprep.mubr.msk.f32.mxu0 %vm211_vm0, %v2795_v10 }
 0x115   :  { %v166_v11 = vpop.permute.xlu0 %165 }
 0x116   :  { %vm186_vm2 = vcmp.eq.s32.totalorder %v3997_v7, %v166_v11 }
 0x117   :  { %v2796_v12 = vsel %vm186_vm2, 1.0, %v3778_v9 }
 0x118   :  { %3005 = vmatmul.mubr.msk.f32.vlgmr.msra.gmra.mrb[0].mxu0 %vm211_vm0, %v2796_v12 }
 0x119   :  { %3266 = vmatpush3.bf16.msra.mxu0 %v4065_v48 }
 0x11a   :  { %3267 = vmatprep.subr.bf16.mxu0 %v3779_v49 }
 0x11d   :  { %3269 = vmatpush3.bf16.msra.mxu0 %v4076_v53 }
 0x11e   :  { %3276 = vmatprep.subr.bf16.mxu0 %v3779_v49 }
 0x1eb   :  { %v3006_v13 = vpop.f32.mrb[0].mxu0 }
 0x1ec   :  { %v302_v14 = vpop.f32.mrb[1].mxu0  ;;  %v347_v16 = vsel %vm343_vm3, %v3006_v13, 0.0 }
 0x1ed   :  { %v344_v15 = vsel %vm343_vm3, %v302_v14, 0.0 }
 0x1ee   :  { %345 = vadd.xlane.f32.xlu1 %v344_v15 }
 0x1f2   :  { %348 = vadd.xlane.f32.xlu1 %v347_v16 }
 0x203   :  { %174 = vperm.xlu1 %3397, %v155_v17  }
 0x207   :  { %177 = vperm.xlu1 %3397, %v156_v18  }
 0x20b   :  { %180 = vperm.xlu1 %3397, %v157_v19  }
 0x20f   :  { %183 = vperm.xlu1 %3397, %v158_v20  }
 0x27b   :  { %v346_v21 = vpop.xlane.xlu1 %345 }
 0x27c   :  { %v369_v22 = vmul.f32 0.03125, %v346_v21 }
 0x27e   :  { %v4019_v23 = vsub.f32 %v302_v14, %v369_v22 }
 0x27f   :  { %v349_v24 = vpop.xlane.xlu1 %348 }
 0x280   :  { %v370_v25 = vmul.f32 0.03125, %v349_v24  ;;  %v385_v26 = vmul.f32 %v4019_v23, %v4019_v23  ;;  %v4124_v24 = vld [vmem:[#allocation7] ss:$0 sm:$0xff] }
 0x282   :  { %v4023_v27 = vsub.f32 %v3006_v13, %v370_v25  ;;  %v393_v28 = vsel %vm343_vm3, %v385_v26, 0.0 }
 0x283   :  { %394 = vadd.xlane.f32.xlu0 %v393_v28  ;;  %v175_v29 = vpop.permute.xlu1 %174 }
 0x284   :  { %v386_v30 = vmul.f32 %v4023_v27, %v4023_v27  ;;  %vm189_vm4 = vcmp.eq.s32.totalorder %v3997_v7, %v175_v29 }
 0x285   :  { %v2799_v31 = vsel %vm189_vm4, 1.0, %v3778_v9 }
 0x286   :  { %v396_v32 = vsel %vm343_vm3, %v386_v30, 0.0  ;;  %3010 = vmatprep.mubr.msk.f32.mxu1 %vm211_vm0, %v2799_v31 }
 0x287   :  { %397 = vadd.xlane.f32.xlu1 %v396_v32  ;;  %v178_v33 = vpop.permute.xlu1 %177 }
 0x288   :  { %vm190_vm5 = vcmp.eq.s32.totalorder %v3997_v7, %v178_v33 }
 0x289   :  { %v2800_v34 = vsel %vm190_vm5, 1.0, %v3778_v9 }
 0x28a   :  { %3011 = vmatmul.mubr.msk.f32.vlgmr.msra.gmra.mrb[0].mxu1 %vm211_vm0, %v2800_v34 }
 0x28b   :  { %v181_v35 = vpop.permute.xlu1 %180  ;;  %3259 = vmatpush3.bf16.msra.mxu1 %v3256_v43 }
 0x28c   :  { %vm191_vm6 = vcmp.eq.s32.totalorder %v3997_v7, %v181_v35  ;;  %3261 = vmatprep.subr.bf16.mxu1 %v3260_v50 }
 0x28d   :  { %v2801_v36 = vsel %vm191_vm6, 1.0, %v3778_v9 }
 0x28e   :  { %3013 = vmatprep.mubr.msk.f32.mxu1 %vm211_vm0, %v2801_v36 }
 0x28f   :  { %v184_v37 = vpop.permute.xlu1 %183  ;;  %3263 = vmatpush3.bf16.msra.mxu1 %v3260_v50 }
 0x290   :  { %vm192_vm7 = vcmp.eq.s32.totalorder %v3997_v7, %v184_v37  ;;  %3270 = vmatprep.subr.bf16.mxu1 %v3779_v49 }
 0x291   :  { %v2802_v38 = vsel %vm192_vm7, 1.0, %v3778_v9 }
 0x292   :  { %3014 = vmatmul.mubr.msk.f32.gmra.mrb[2].mxu1 %vm211_vm0, %v2802_v38 }
 0x298   :  { %171 = vperm.xlu1 %3397, %v154_v39  }
 0x299   :  { %168 = vperm.xlu0 %3396, %v153_v40  }
 0x29c   :  { %714 = vrot.lane.b32.xlu1 %v630_v54, %s3780_s28 }
 0x310   :  { %v395_v55 = vpop.xlane.xlu0 %394 }
 0x311   :  { %v417_v56 = vmul.f32 0.03125, %v395_v55 }
 0x313   :  { %v425_v57 = vadd.f32 1e-05, %v417_v56 }
 0x314   :  { %v398_v58 = vpop.xlane.xlu1 %397 }
 0x315   :  { %3398 = vrsqrt.f32 %v425_v57  ;;  %v418_v59 = vmul.f32 0.03125, %v398_v58 }
 0x317   :  { %v426_v60 = vadd.f32 1e-05, %v418_v59 }
 0x318   :  { %v169_v61 = vpop.permute.xlu0 %168  ;;  %v172_v62 = vpop.permute.xlu1 %171 }
 0x319   :  { %3400 = vrsqrt.f32 %v426_v60  ;;  %vm187_vm8 = vcmp.eq.s32.totalorder %v3997_v7, %v169_v61  ;;  %vm188_vm9 = vcmp.eq.s32.totalorder %v3997_v7, %v172_v62 }
 0x31a   :  { %v2797_v63 = vsel %vm187_vm8, 1.0, %v3778_v9  ;;  %v2798_v0 = vsel %vm188_vm9, 1.0, %v3778_v9 }
 0x31b   :  { %3007 = vmatprep.mubr.msk.f32.mxu0 %vm211_vm0, %v2797_v63 }
 0x31c   :  { %3008 = vmatmul.mubr.msk.f32.gmra.mrb[2].mxu0 %vm211_vm0, %v2798_v0  ;;  %v715_v35 = vpop.permute.xlu1 %714 }
 0x31d   :  { %3044 = vmatprep.mubr.msk.f32.mxu0 %vm3781_vm10, %v3778_v9 }
 0x31f   :  { %v3399_v2 = vpop.eup %3398 }
 0x320   :  { %v441_v4 = vmul.f32 %v3399_v2, %v4019_v23  ;;  %3045 = vmatmul.mubr.msk.f32.vlgmr.msra.gmra.mrb[4].mxu0 %vm343_vm3, %v629_v1 }
 0x321   :  { %3278 = vmatpush3.bf16.msra.mxu0 %v4065_v48  ;;  %3066 = vmatprep.mubr.msk.f32.mxu0 %vm3781_vm10, %v3778_v9 }
 0x322   :  { %v455_v6 = vmul.f32 %v4093_v3, %v441_v4  ;;  %3279 = vmatprep.subr.bf16.mxu0 %v3779_v49 }
 0x323   :  { %v3401_v7 = vpop.eup %3400 }
 0x324   :  { %v442_v8 = vmul.f32 %v3401_v7, %v4023_v27  ;;  %v469_v10 = vadd.f32 %v4100_v5, %v455_v6 }
 0x325   :  { %3281 = vmatpush3.bf16.msra.mxu0 %v4076_v53 }
 0x326   :  { %v456_v11 = vmul.f32 %v4093_v3, %v442_v8  ;;  %3024 = vmatprep.mubr.msk.f32.mxu1 %vm343_vm3, %v469_v10  ;;  %3288 = vmatprep.subr.bf16.mxu0 %v3779_v49 }
 0x328   :  { %v470_v12 = vadd.f32 %v4100_v5, %v456_v11 }
 0x32a   :  { %3025 = vmatmul.mubr.msk.f32.vlgmr.msra.gmra.mrb[4].mxu1 %vm343_vm3, %v470_v12 }
 0x32b   :  { %3272 = vmatpush3.bf16.msra.mxu1 %v4065_v48 }
 0x32c   :  { %3273 = vmatprep.subr.bf16.mxu1 %v3779_v49 }
 0x32f   :  { %3275 = vmatpush3.bf16.msra.mxu1 %v4076_v53 }
 0x330   :  { %3282 = vmatprep.subr.bf16.mxu1 %v3779_v49 }
 0x35d   :  { %v3012_v13 = vpop.f32.mrb[0].mxu1 }
 0x35e   :  { %v322_v14 = vpop.f32.mrb[1].mxu1  ;;  %v359_v31 = vsel %vm343_vm3, %v3012_v13, 0.0 }
 0x35f   :  { %v356_v21 = vsel %vm343_vm3, %v322_v14, 0.0 }
 0x365   :  { %v4119_v15 = vpop.f32.mrb[2].mxu1 }
 0x366   :  { %v332_v16 = vpop.f32.mrb[3].mxu1  ;;  %v365_v39 = vsel %vm343_vm3, %v4119_v15, 0.0 }
 0x367   :  { %v362_v23 = vsel %vm343_vm3, %v332_v16, 0.0 }
 0x3ef   :  { %v3009_v17 = vpop.f32.mrb[2].mxu0 }
 0x3f0   :  { %v312_v18 = vpop.f32.mrb[3].mxu0  ;;  %v353_v19 = vsel %vm343_vm3, %v3009_v17, 0.0 }
 0x3f1   :  { %354 = vadd.xlane.f32.xlu0 %v353_v19  ;;  %v350_v30 = vsel %vm343_vm3, %v312_v18, 0.0 }
 0x3f3   :  { %v701_v20 = vpop.f32.mrb[4].mxu0 }
 0x3f4   :  { %v3046_v22 = vpop.f32.mrb[5].mxu0 }
 0x3f5   :  { %357 = vadd.xlane.f32.xlu0 %v356_v21 }
 0x3f9   :  { %363 = vadd.xlane.f32.xlu0 %v362_v23 }
 0x3fd   :  { %v4126_v25 = vpop.f32.mrb[4].mxu1 }
 0x3fe   :  { %v578_v26 = vpop.f32.mrb[5].mxu1 }
 0x3ff   :  { %v579_v27 = vadd.f32 %v4124_v24, %v578_v26 }
 0x401   :  { %v705_v28 = vadd.f32 %v701_v20, %v579_v27 }
 0x403   :  { %3402 = vtanh.f32 %v705_v28  ;;  %v2823_v32 = vmul.f32 -1.442695, %v705_v28 }
 0x405   :  { %3404 = vpow2.f32 %v2823_v32 }
 0x40d   :  { %v3403_v29 = vpop.eup %3402 }
 0x40e   :  { %719 = vrot.lane.b32.xlu1 %v3403_v29, %s3782_s23 }
 0x40f   :  { %v3405_v33 = vpop.eup %3404 }
 0x410   :  { %v709_v34 = vadd.f32 1.0, %v3405_v33 }
 0x412   :  { %3406 = vrcp.f32 %v709_v34 }
 0x41c   :  { %v4132_v36 = vpop.eup %3406 }
 0x41d   :  { %v717_v6 = vmul.f32 %v4132_v36, %v715_v35 }
 0x432   :  { %351 = vadd.xlane.f32.xlu1 %v350_v30 }
 0x436   :  { %360 = vadd.xlane.f32.xlu1 %v359_v31 }
 0x47e   :  { %v355_v40 = vpop.xlane.xlu0 %354 }
 0x47f   :  { %v372_v41 = vmul.f32 0.03125, %v355_v40 }
 0x480   :  { %v720_v37 = vpop.permute.xlu1 %719 }
 0x481   :  { %v722_v38 = vmul.f32 %v4132_v36, %v720_v37  ;;  %v380_v45 = vsub.f32 %v3009_v17, %v372_v41 }
 0x482   :  { %v358_v42 = vpop.xlane.xlu0 %357 }
 0x483   :  { %724 = vrot.lane.b32.xlu1 %v722_v38, %s3780_s28  ;;  %v373_v46 = vmul.f32 0.03125, %v358_v42  ;;  %v388_v56 = vmul.f32 %v380_v45, %v380_v45 }
 0x485   :  { %v381_v52 = vsub.f32 %v322_v14, %v373_v46  ;;  %v402_v60 = vsel %vm343_vm3, %v388_v56, 0.0 }
 0x486   :  { %v364_v57 = vpop.xlane.xlu0 %363 }
 0x487   :  { %v375_v58 = vmul.f32 0.03125, %v364_v57  ;;  %v389_v61 = vmul.f32 %v381_v52, %v381_v52 }
 0x489   :  { %v383_v62 = vsub.f32 %v332_v16, %v375_v58  ;;  %v405_v63 = vsel %vm343_vm3, %v389_v61, 0.0 }
 0x48b   :  { %v391_v2 = vmul.f32 %v383_v62, %v383_v62 }
 0x48d   :  { %v411_v4 = vsel %vm343_vm3, %v391_v2, 0.0 }
 0x4a7   :  { %366 = vadd.xlane.f32.xlu1 %v365_v39 }
 0x4bf   :  { %v352_v43 = vpop.xlane.xlu1 %351 }
 0x4c0   :  { %v371_v44 = vmul.f32 0.03125, %v352_v43 }
 0x4c2   :  { %v379_v47 = vsub.f32 %v312_v18, %v371_v44 }
 0x4c3   :  { %v361_v50 = vpop.xlane.xlu1 %360 }
 0x4c4   :  { %v387_v51 = vmul.f32 %v379_v47, %v379_v47  ;;  %v374_v54 = vmul.f32 0.03125, %v361_v50 }
 0x4c6   :  { %v399_v55 = vsel %vm343_vm3, %v387_v51, 0.0  ;;  %v382_v59 = vsub.f32 %v3012_v13, %v374_v54 }
 0x4c7   :  { %400 = vadd.xlane.f32.xlu1 %v399_v55 }
 0x4c8   :  { %v390_v0 = vmul.f32 %v382_v59, %v382_v59 }
 0x4ca   :  { %v408_v1 = vsel %vm343_vm3, %v390_v0, 0.0 }
 0x4cb   :  { %403 = vadd.xlane.f32.xlu1 %v402_v60 }
 0x4cf   :  { %406 = vadd.xlane.f32.xlu1 %v405_v63 }
 0x4d3   :  { %409 = vadd.xlane.f32.xlu1 %v408_v1 }
 0x4d7   :  { %412 = vadd.xlane.f32.xlu1 %v411_v4 }
 0x4f5   :  { %v725_v7 = vpop.permute.xlu1 %724 }
 0x4f6   :  { %v4144_v8 = vadd.f32 %v725_v7, %v717_v6 }
 0x4f8   :  { %3408 = vtanh.f32 %v4144_v8 }
 0x502   :  { %v3409_v10 = vpop.eup %3408 }
 0x503   :  { %730 = vrot.lane.b32.xlu0 %v3409_v10, %s3782_s23  ;;  %v584_v10 = vadd.f32 %v4126_v25, %v4124_v24 }
 0x534   :  { %v367_v11 = vpop.xlane.xlu1 %366 }
 0x535   :  { %v376_v12 = vmul.f32 0.03125, %v367_v11 }
 0x537   :  { %v384_v13 = vsub.f32 %v4119_v15, %v376_v12 }
 0x539   :  { %v392_v14 = vmul.f32 %v384_v13, %v384_v13 }
 0x53b   :  { %v414_v16 = vsel %vm343_vm3, %v392_v14, 0.0 }
 0x53c   :  { %415 = vadd.xlane.f32.xlu1 %v414_v16 }
 0x554   :  { %v401_v17 = vpop.xlane.xlu1 %400 }
 0x555   :  { %v419_v18 = vmul.f32 0.03125, %v401_v17 }
 0x557   :  { %v427_v19 = vadd.f32 1e-05, %v419_v18 }
 0x558   :  { %v404_v20 = vpop.xlane.xlu1 %403 }
 0x559   :  { %3410 = vrsqrt.f32 %v427_v19  ;;  %v420_v21 = vmul.f32 0.03125, %v404_v20 }
 0x55b   :  { %v428_v22 = vadd.f32 1e-05, %v420_v21 }
 0x55c   :  { %v407_v23 = vpop.xlane.xlu1 %406 }
 0x55d   :  { %3412 = vrsqrt.f32 %v428_v22  ;;  %v421_v26 = vmul.f32 0.03125, %v407_v23 }
 0x55f   :  { %v429_v27 = vadd.f32 1e-05, %v421_v26 }
 0x560   :  { %v410_v28 = vpop.xlane.xlu1 %409 }
 0x561   :  { %3414 = vrsqrt.f32 %v429_v27  ;;  %v422_v29 = vmul.f32 0.03125, %v410_v28 }
 0x563   :  { %v3411_v30 = vpop.eup %3410  ;;  %v430_v15 = vadd.f32 1e-05, %v422_v29 }
 0x564   :  { %v413_v31 = vpop.xlane.xlu1 %412  ;;  %v443_v32 = vmul.f32 %v3411_v30, %v379_v47 }
 0x565   :  { %3416 = vrsqrt.f32 %v430_v15  ;;  %v423_v33 = vmul.f32 0.03125, %v413_v31 }
 0x566   :  { %v457_v34 = vmul.f32 %v4093_v3, %v443_v32 }
 0x567   :  { %v3413_v35 = vpop.eup %3412  ;;  %v431_v37 = vadd.f32 1e-05, %v423_v33 }
 0x568   :  { %v471_v38 = vadd.f32 %v4100_v5, %v457_v34  ;;  %v444_v39 = vmul.f32 %v3413_v35, %v380_v45 }
 0x569   :  { %3418 = vrsqrt.f32 %v431_v37 }
 0x56a   :  { %3027 = vmatprep.mubr.msk.f32.mxu1 %vm343_vm3, %v471_v38  ;;  %v458_v40 = vmul.f32 %v4093_v3, %v444_v39 }
 0x56b   :  { %v3415_v41 = vpop.eup %3414 }
 0x56c   :  { %v472_v42 = vadd.f32 %v4100_v5, %v458_v40  ;;  %v445_v43 = vmul.f32 %v3415_v41, %v381_v52 }
 0x56e   :  { %3028 = vmatmul.mubr.msk.f32.gmra.mrb[6].mxu1 %vm343_vm3, %v472_v42  ;;  %v459_v44 = vmul.f32 %v4093_v3, %v445_v43 }
 0x56f   :  { %v3417_v46 = vpop.eup %3416 }
 0x570   :  { %v473_v47 = vadd.f32 %v4100_v5, %v459_v44  ;;  %v446_v50 = vmul.f32 %v3417_v46, %v382_v59 }
 0x572   :  { %3030 = vmatprep.mubr.msk.f32.mxu1 %vm343_vm3, %v473_v47  ;;  %v460_v45 = vmul.f32 %v4093_v3, %v446_v50 }
 0x573   :  { %v3419_v51 = vpop.eup %3418 }
 0x574   :  { %v474_v54 = vadd.f32 %v4100_v5, %v460_v45  ;;  %v447_v55 = vmul.f32 %v3419_v51, %v383_v62 }
 0x575   :  { %v731_v56 = vpop.permute.xlu0 %730 }
 0x576   :  { %v733_v57 = vmul.f32 %v4132_v36, %v731_v56  ;;  %3031 = vmatmul.mubr.msk.f32.gmra.mrb[8].mxu1 %vm343_vm3, %v474_v54  ;;  %v461_v52 = vmul.f32 %v4093_v3, %v447_v55 }
 0x578   :  { %735 = vrot.lane.b32.xlu0 %v733_v57, %s3780_s28  ;;  %v475_v58 = vadd.f32 %v4100_v5, %v461_v52 }
 0x57a   :  { %3033 = vmatprep.mubr.msk.f32.mxu1 %vm343_vm3, %v475_v58 }
 0x5c9   :  { %v416_v59 = vpop.xlane.xlu1 %415 }
 0x5ca   :  { %v424_v60 = vmul.f32 0.03125, %v416_v59 }
 0x5cc   :  { %v432_v61 = vadd.f32 1e-05, %v424_v60 }
 0x5ce   :  { %3420 = vrsqrt.f32 %v432_v61 }
 0x5d8   :  { %v3421_v63 = vpop.eup %3420 }
 0x5d9   :  { %v448_v0 = vmul.f32 %v3421_v63, %v384_v13 }
 0x5db   :  { %v462_v62 = vmul.f32 %v4093_v3, %v448_v0 }
 0x5dd   :  { %v476_v36 = vadd.f32 %v4100_v5, %v462_v62 }
 0x5df   :  { %3034 = vmatmul.mubr.msk.f32.gmra.mrb[10].mxu1 %vm343_vm3, %v476_v36 }
 0x5e0   :  { %3055 = vmatprep.mubr.msk.f32.mxu1 %vm3781_vm10, %v3778_v9 }
 0x5ea   :  { %v736_v1 = vpop.permute.xlu0 %735 }
 0x5eb   :  { %738 = vst.msk [vmem:[#allocation3] sm:$0xff] %vm343_vm3, %v736_v1  ;;  %3056 = vmatmul.mubr.msk.f32.vlgmr.msra.gmra.mrb[12].mxu1 %vm343_vm3, %v736_v1 }
 0x5ec   :  { %3284 = vmatpush3.bf16.msra.mxu1 %v4065_v48  ;;  %3077 = vmatprep.mubr.msk.f32.mxu1 %vm3781_vm10, %v3778_v9 }
 0x5ed   :  { %3285 = vmatprep.subr.bf16.mxu1 %v3779_v49 }
 0x5f0   :  { %3287 = vmatpush3.bf16.msra.mxu1 %v4076_v53 }
 0x5f1   :  { %3294 = vmatprep.subr.bf16.mxu1 %v3779_v49 }
 0x641   :  { %v4180_v3 = vpop.f32.mrb[6].mxu1 }
 0x642   :  { %v588_v5 = vpop.f32.mrb[7].mxu1  ;;  %v594_v50 = vadd.f32 %v4180_v3, %v4124_v24 }
 0x649   :  { %v4182_v2 = vpop.f32.mrb[8].mxu1 }
 0x64a   :  { %v4184_v4 = vpop.f32.mrb[9].mxu1 }
 0x6b2   :  { %v4186_v6 = vpop.f32.mrb[10].mxu1 }
 0x6b3   :  { %v4188_v7 = vpop.f32.mrb[11].mxu1 }
 0x6be   :  { %v808_v11 = vpop.f32.mrb[12].mxu1 }
 0x6bf   :  { %v812_v12 = vadd.f32 %v808_v11, %v584_v10  ;;  %v3057_v13 = vpop.f32.mrb[13].mxu1 }
 0x6c1   :  { %3422 = vtanh.f32 %v812_v12  ;;  %v2825_v16 = vmul.f32 -1.442695, %v812_v12 }
 0x6c3   :  { %3424 = vpow2.f32 %v2825_v16 }
 0x6cb   :  { %v3423_v14 = vpop.eup %3422 }
 0x6cc   :  { %822 = vrot.lane.b32.xlu1 %v3423_v14, %s3782_s23 }
 0x6cd   :  { %v3425_v17 = vpop.eup %3424 }
 0x6ce   :  { %v816_v18 = vadd.f32 1.0, %v3425_v17 }
 0x6d0   :  { %3426 = vrcp.f32 %v816_v18 }
 0x6da   :  { %v3427_v19 = vpop.eup %3426 }
 0x6db   :  { %v820_v22 = vmul.f32 %v3427_v19, %v4144_v8  ;;  %v589_v8 = vadd.f32 %v4124_v24, %v588_v5  ;;  %v599_v5 = vadd.f32 %v4124_v24, %v4184_v4 }
 0x73e   :  { %v823_v20 = vpop.permute.xlu1 %822 }
 0x73f   :  { %v825_v21 = vmul.f32 %v3427_v19, %v823_v20 }
 0x741   :  { %827 = vrot.lane.b32.xlu0 %v825_v21, %s3780_s28 }
 0x7b3   :  { %v828_v25 = vpop.permute.xlu0 %827 }
 0x7b4   :  { %v830_v23 = vadd.f32 %v828_v25, %v820_v22 }
 0x7b6   :  { %3428 = vtanh.f32 %v830_v23 }
 0x7c0   :  { %v3429_v26 = vpop.eup %3428 }
 0x7c1   :  { %833 = vrot.lane.b32.xlu0 %v3429_v26, %s3782_s23 }
 0x833   :  { %v834_v27 = vpop.permute.xlu0 %833 }
 0x834   :  { %v836_v28 = vmul.f32 %v3427_v19, %v834_v27 }
 0x836   :  { %838 = vrot.lane.b32.xlu0 %v836_v28, %s3780_s28  ;;  %v604_v28 = vadd.f32 %v4182_v2, %v4124_v24 }
 0x8a8   :  { %v839_v29 = vpop.permute.xlu0 %838 }
 0x8a9   :  { %841 = vst.msk [vmem:[#allocation3 + $0x8] sm:$0xff] %vm343_vm3, %v839_v29  ;;  %3067 = vmatmul.mubr.msk.f32.vlgmr.msra.gmra.mrb[6].mxu0 %vm343_vm3, %v839_v29 }
 0x8aa   :  { %3290 = vmatpush3.bf16.msra.mxu0 %v4065_v48  ;;  %3088 = vmatprep.mubr.msk.f32.mxu0 %vm3781_vm10, %v3778_v9 }
 0x8ab   :  { %3291 = vmatprep.subr.bf16.mxu0 %v3779_v49 }
 0x8ae   :  { %3293 = vmatpush3.bf16.msra.mxu0 %v4076_v53 }
 0x8af   :  { %3300 = vmatprep.subr.bf16.mxu0 %v3779_v49 }
 0x97c   :  { %v911_v30 = vpop.f32.mrb[6].mxu0 }
 0x97d   :  { %v915_v15 = vadd.f32 %v911_v30, %v589_v8  ;;  %v3068_v31 = vpop.f32.mrb[7].mxu0 }
 0x97f   :  { %3430 = vtanh.f32 %v915_v15  ;;  %v2827_v33 = vmul.f32 -1.442695, %v915_v15 }
 0x981   :  { %3432 = vpow2.f32 %v2827_v33 }
 0x989   :  { %v3431_v32 = vpop.eup %3430 }
 0x98a   :  { %925 = vrot.lane.b32.xlu0 %v3431_v32, %s3782_s23 }
 0x98b   :  { %v3433_v34 = vpop.eup %3432 }
 0x98c   :  { %v919_v35 = vadd.f32 1.0, %v3433_v34 }
 0x98e   :  { %3434 = vrcp.f32 %v919_v35 }
 0x998   :  { %v3435_v37 = vpop.eup %3434 }
 0x999   :  { %v923_v40 = vmul.f32 %v3435_v37, %v830_v23 }
 0x9fc   :  { %v926_v38 = vpop.permute.xlu0 %925 }
 0x9fd   :  { %v928_v39 = vmul.f32 %v3435_v37, %v926_v38  ;;  %v1474_v38 = vld [vmem:[%s4611_s9] sm:$0xff] }
 0x9ff   :  { %930 = vrot.lane.b32.xlu0 %v928_v39, %s3780_s28  ;;  %v1475_v39 = vld [vmem:[%s4611_s9 + $0x8] sm:$0xff] }
 0xa71   :  { %v931_v41 = vpop.permute.xlu0 %930 }
 0xa72   :  { %v933_v42 = vadd.f32 %v931_v41, %v923_v40  ;;  %v3312_v40 = vpack.c.bf16 %v1475_v39, %v1474_v38 }
 0xa74   :  { %3436 = vtanh.f32 %v933_v42 }
 0xa7e   :  { %v3437_v43 = vpop.eup %3436 }
 0xa7f   :  { %936 = vrot.lane.b32.xlu1 %v3437_v43, %s3782_s23 }
 0xaf1   :  { %v937_v44 = vpop.permute.xlu1 %936 }
 0xaf2   :  { %v939_v46 = vmul.f32 %v3435_v37, %v937_v44  ;;  %v1476_v44 = vld [vmem:[%s4611_s9 + $0x10] sm:$0xff] }
 0xaf4   :  { %941 = vrot.lane.b32.xlu0 %v939_v46, %s3780_s28  ;;  %v1477_v46 = vld [vmem:[%s4611_s9 + $0x18] sm:$0xff] }
 0xb66   :  { %v942_v47 = vpop.permute.xlu0 %941 }
 0xb67   :  { %944 = vst.msk [vmem:[#allocation3 + $0x10] sm:$0xff] %vm343_vm3, %v942_v47  ;;  %3078 = vmatmul.mubr.msk.f32.vlgmr.msra.gmra.mrb[14].mxu1 %vm343_vm3, %v942_v47  ;;  %v3316_v47 = vpack.c.bf16 %v1477_v46, %v1476_v44 }
 0xb68   :  { %3296 = vmatpush3.bf16.msra.mxu1 %v4065_v48  ;;  %3099 = vmatprep.mubr.msk.f32.mxu1 %vm3781_vm10, %v3778_v9 }
 0xb69   :  { %3297 = vmatprep.subr.bf16.mxu1 %v3779_v49 }
 0xb6c   :  { %3299 = vmatpush3.bf16.msra.mxu1 %v4076_v53 }
 0xb6d   :  { %3306 = vmatprep.subr.bf16.mxu1 %v3779_v49 }
 0xc3a   :  { %v1014_v45 = vpop.f32.mrb[14].mxu1 }
 0xc3b   :  { %v1018_v51 = vadd.f32 %v1014_v45, %v594_v50  ;;  %v3079_v54 = vpop.f32.mrb[15].mxu1  ;;  %v1466_v45 = vld [vmem:[#allocation3] sm:$0xff] }
 0xc3c   :  { %v1468_v54 = vld [vmem:[#allocation3 + $0x10] sm:$0xff] }
 0xc3d   :  { %3438 = vtanh.f32 %v1018_v51  ;;  %v2829_v56 = vmul.f32 -1.442695, %v1018_v51  ;;  %v1467_v51 = vld [vmem:[#allocation3 + $0x8] sm:$0xff] }
 0xc3f   :  { %3440 = vpow2.f32 %v2829_v56 }
 0xc47   :  { %v3439_v55 = vpop.eup %3438 }
 0xc48   :  { %1028 = vrot.lane.b32.xlu1 %v3439_v55, %s3782_s23 }
 0xc49   :  { %v3441_v57 = vpop.eup %3440 }
 0xc4a   :  { %v1022_v52 = vadd.f32 1.0, %v3441_v57 }
 0xc4c   :  { %3442 = vrcp.f32 %v1022_v52  ;;  %v609_v52 = vadd.f32 %v4124_v24, %v4188_v7 }
 0xc56   :  { %v3443_v58 = vpop.eup %3442 }
 0xc57   :  { %v1026_v61 = vmul.f32 %v3443_v58, %v933_v42 }
 0xcba   :  { %v1029_v59 = vpop.permute.xlu1 %1028 }
 0xcbb   :  { %v1031_v60 = vmul.f32 %v3443_v58, %v1029_v59 }
 0xcbd   :  { %1033 = vrot.lane.b32.xlu0 %v1031_v60, %s3780_s28 }
 0xd2f   :  { %v1034_v63 = vpop.permute.xlu0 %1033 }
 0xd30   :  { %v1036_v0 = vadd.f32 %v1034_v63, %v1026_v61 }
 0xd32   :  { %3444 = vtanh.f32 %v1036_v0 }
 0xd3c   :  { %v3445_v62 = vpop.eup %3444 }
 0xd3d   :  { %1039 = vrot.lane.b32.xlu1 %v3445_v62, %s3782_s23 }
 0xdaf   :  { %v1040_v36 = vpop.permute.xlu1 %1039 }
 0xdb0   :  { %v1042_v1 = vmul.f32 %v3443_v58, %v1040_v36 }
 0xdb2   :  { %1044 = vrot.lane.b32.xlu0 %v1042_v1, %s3780_s28 }
 0xe24   :  { %v1045_v3 = vpop.permute.xlu0 %1044 }
 0xe25   :  { %1047 = vst.msk [vmem:[#allocation3 + $0x18] sm:$0xff] %vm343_vm3, %v1045_v3  ;;  %3089 = vmatmul.mubr.msk.f32.vlgmr.msra.gmra.mrb[8].mxu0 %vm343_vm3, %v1045_v3 }
 0xe26   :  { %3302 = vmatpush3.bf16.msra.mxu0 %v4065_v48  ;;  %3110 = vmatprep.mubr.msk.f32.mxu0 %vm3781_vm10, %v3778_v9 }
 0xe27   :  { %3303 = vmatprep.subr.bf16.mxu0 %v3779_v49 }
 0xe2a   :  { %3305 = vmatpush3.bf16.msra.mxu0 %v4076_v53 }
 0xe2b   :  { %3313 = vmatprep.subr.bf16.mxu0 %v3312_v40 }
 0xe2c   :  { %v1469_v55 = vld [vmem:[#allocation3 + $0x18] sm:$0xff] }
 0xef8   :  { %v1117_v10 = vpop.f32.mrb[8].mxu0 }
 0xef9   :  { %v1121_v11 = vadd.f32 %v1117_v10, %v599_v5  ;;  %v3090_v12 = vpop.f32.mrb[9].mxu0 }
 0xefb   :  { %3446 = vtanh.f32 %v1121_v11  ;;  %v2831_v14 = vmul.f32 -1.442695, %v1121_v11 }
 0xefd   :  { %3448 = vpow2.f32 %v2831_v14 }
 0xf05   :  { %v3447_v13 = vpop.eup %3446 }
 0xf06   :  { %1131 = vrot.lane.b32.xlu1 %v3447_v13, %s3782_s23 }
 0xf07   :  { %v3449_v16 = vpop.eup %3448 }
 0xf08   :  { %v1125_v17 = vadd.f32 1.0, %v3449_v16 }
 0xf0a   :  { %3450 = vrcp.f32 %v1125_v17 }
 0xf14   :  { %v3451_v18 = vpop.eup %3450 }
 0xf15   :  { %v1129_v21 = vmul.f32 %v3451_v18, %v1036_v0 }
 0xf78   :  { %v1132_v19 = vpop.permute.xlu1 %1131 }
 0xf79   :  { %v1134_v20 = vmul.f32 %v3451_v18, %v1132_v19  ;;  %v1622_v19 = vld [vmem:[#allocation13] sm:$0xff] }
 0xf7b   :  { %1136 = vrot.lane.b32.xlu0 %v1134_v20, %s3780_s28  ;;  %v1623_v20 = vld [vmem:[#allocation13 + $0x8] sm:$0xff] }
 0xfed   :  { %v1137_v22 = vpop.permute.xlu0 %1136 }
 0xfee   :  { %v1139_v4 = vadd.f32 %v1137_v22, %v1129_v21  ;;  %v4290_v21 = vpack.c.bf16 %v1623_v20, %v1622_v19  ;;  %v1624_v22 = vld [vmem:[#allocation13 + $0x10] sm:$0xff] }
 0xff0   :  { %3452 = vtanh.f32 %v1139_v4 }
 0xffa   :  { %v3453_v25 = vpop.eup %3452 }
 0xffb   :  { %1142 = vrot.lane.b32.xlu1 %v3453_v25, %s3782_s23 }
0x106d   :  { %v1143_v23 = vpop.permute.xlu1 %1142 }
0x106e   :  { %v1145_v26 = vmul.f32 %v3451_v18, %v1143_v23 }
0x1070   :  { %1147 = vrot.lane.b32.xlu0 %v1145_v26, %s3780_s28 }
0x10e2   :  { %v1148_v27 = vpop.permute.xlu0 %1147 }
0x10e3   :  { %1150 = vst.msk [vmem:[#allocation3 + $0x20] sm:$0xff] %vm343_vm3, %v1148_v27  ;;  %3100 = vmatmul.mubr.msk.f32.vlgmr.msra.gmra.mrb[16].mxu1 %vm343_vm3, %v1148_v27  ;;  %v1627_v27 = vld [vmem:[%s4615_s13] sm:$0xff] }
0x10e4   :  { %3308 = vmatpush3.bf16.msra.mxu1 %v4065_v48  ;;  %3121 = vmatprep.mubr.msk.f32.mxu1 %vm3781_vm10, %v3778_v9 }
0x10e5   :  { %3309 = vmatprep.subr.bf16.mxu1 %v3779_v49 }
0x10e8   :  { %3311 = vmatpush3.bf16.msra.mxu1 %v4076_v53 }
0x10e9   :  { %3320 = vmatprep.subr.bf16.mxu1 %v3779_v49 }
0x10ea   :  { %v1470_v56 = vld [vmem:[#allocation3 + $0x20] sm:$0xff] }
0x11b6   :  { %v1220_v29 = vpop.f32.mrb[16].mxu1 }
0x11b7   :  { %v1224_v8 = vadd.f32 %v1220_v29, %v604_v28  ;;  %v3101_v30 = vpop.f32.mrb[17].mxu1  ;;  %v1626_v29 = vld [vmem:[%s4614_s12] sm:$0xff] }
0x11b8   :  { %v614_v30 = vadd.f32 %v4186_v6, %v4124_v24 }
0x11b9   :  { %3454 = vtanh.f32 %v1224_v8  ;;  %v2833_v48 = vmul.f32 -1.442695, %v1224_v8 }
0x11bb   :  { %3456 = vpow2.f32 %v2833_v48 }
0x11c3   :  { %v3455_v15 = vpop.eup %3454 }
0x11c4   :  { %1234 = vrot.lane.b32.xlu1 %v3455_v15, %s3782_s23 }
0x11c5   :  { %v3457_v31 = vpop.eup %3456 }
0x11c6   :  { %v1228_v32 = vadd.f32 1.0, %v3457_v31 }
0x11c8   :  { %3458 = vrcp.f32 %v1228_v32  ;;  %v4324_v32 = vld [vmem:[#allocation12] ss:$0 sm:$0xff] }
0x11d2   :  { %v3459_v33 = vpop.eup %3458 }
0x11d3   :  { %v1232_v35 = vmul.f32 %v3459_v33, %v1139_v4  ;;  %v1625_v4 = vld [vmem:[#allocation13 + $0x18] sm:$0xff] }
0x11d4   :  { %v4294_v25 = vpack.c.bf16 %v1625_v4, %v1624_v22 }
0x1236   :  { %v1235_v34 = vpop.permute.xlu1 %1234 }
0x1237   :  { %v1237_v53 = vmul.f32 %v3459_v33, %v1235_v34 }
0x1239   :  { %1239 = vrot.lane.b32.xlu0 %v1237_v53, %s3780_s28 }
0x12ab   :  { %v1240_v37 = vpop.permute.xlu0 %1239 }
0x12ac   :  { %v1242_v2 = vadd.f32 %v1240_v37, %v1232_v35 }
0x12ae   :  { %3460 = vtanh.f32 %v1242_v2 }
0x12b8   :  { %v3461_v41 = vpop.eup %3460 }
0x12b9   :  { %1245 = vrot.lane.b32.xlu1 %v3461_v41, %s3782_s23 }
0x132b   :  { %v1246_v42 = vpop.permute.xlu1 %1245 }
0x132c   :  { %v1248_v43 = vmul.f32 %v3459_v33, %v1246_v42 }
0x132e   :  { %1250 = vrot.lane.b32.xlu0 %v1248_v43, %s3780_s28 }
0x13a0   :  { %v1251_v50 = vpop.permute.xlu0 %1250 }
0x13a1   :  { %1253 = vst.msk [vmem:[#allocation3 + $0x28] sm:$0xff] %vm343_vm3, %v1251_v50  ;;  %3111 = vmatmul.mubr.msk.f32.vlgmr.msra.gmra.mrb[10].mxu0 %vm343_vm3, %v1251_v50 }
0x13a2   :  { %3315 = vmatpush3.bf16.msra.mxu0 %v3312_v40  ;;  %3132 = vmatprep.mubr.msk.f32.mxu0 %vm343_vm3, %v1466_v45 }
0x13a3   :  { %3317 = vmatprep.subr.bf16.mxu0 %v3316_v47 }
0x13a6   :  { %3319 = vmatpush3.bf16.msra.mxu0 %v3316_v47 }
0x13a7   :  { %3332 = vmatprep.subr.bf16.mxu0 %v3779_v49 }
0x13a8   :  { %v1471_v57 = vld [vmem:[#allocation3 + $0x28] sm:$0xff] }
0x13a9   :  { %3133 = vmatmul.mubr.msk.f32.vlgmr.msra.gmra.mrb[12].mxu0 %vm343_vm3, %v1467_v51 }
0x13aa   :  { %3135 = vmatprep.mubr.msk.f32.mxu0 %vm343_vm3, %v1468_v54  ;;  %3334 = vmatpush3.bf16.msra.mxu0 %v4290_v21 }
0x13ab   :  { %3335 = vmatprep.subr.bf16.mxu0 %v3779_v49 }
0x13ad   :  { %3136 = vmatmul.mubr.msk.f32.gmra.mrb[14].mxu0 %vm343_vm3, %v1469_v55 }
0x13ae   :  { %3138 = vmatprep.mubr.msk.f32.mxu0 %vm343_vm3, %v1470_v56  ;;  %3337 = vmatpush3.bf16.msra.mxu0 %v4294_v25 }
0x13af   :  { %3344 = vmatprep.subr.bf16.mxu0 %v3779_v49 }
0x13b1   :  { %3139 = vmatmul.mubr.msk.f32.gmra.mrb[16].mxu0 %vm343_vm3, %v1471_v57 }
0x1474   :  { %v1323_v58 = vpop.f32.mrb[10].mxu0 }
0x1475   :  { %v1327_v59 = vadd.f32 %v1323_v58, %v609_v52  ;;  %v3112_v60 = vpop.f32.mrb[11].mxu0 }
0x1477   :  { %3462 = vtanh.f32 %v1327_v59  ;;  %v2835_v5 = vmul.f32 -1.442695, %v1327_v59 }
0x1479   :  { %3464 = vpow2.f32 %v2835_v5 }
0x147c   :  { %v4274_v61 = vpop.f32.mrb[12].mxu0 }
0x147d   :  { %v1575_v63 = vpop.f32.mrb[13].mxu0 }
0x147e   :  { %v1576_v33 = vadd.f32 %v4324_v32, %v1575_v63 }
0x1480   :  { %v4276_v0 = vpop.f32.mrb[14].mxu0 }
0x1481   :  { %v3463_v62 = vpop.eup %3462  ;;  %v4278_v36 = vpop.f32.mrb[15].mxu0 }
0x1482   :  { %1337 = vrot.lane.b32.xlu1 %v3463_v62, %s3782_s23 }
0x1483   :  { %v3465_v7 = vpop.eup %3464 }
0x1484   :  { %v4281_v1 = vpop.f32.mrb[16].mxu0  ;;  %v1331_v10 = vadd.f32 1.0, %v3465_v7 }
0x1485   :  { %v4283_v3 = vpop.f32.mrb[17].mxu0 }
0x1486   :  { %3466 = vrcp.f32 %v1331_v10  ;;  %v1581_v10 = vadd.f32 %v4274_v61, %v4324_v32 }
0x1490   :  { %v3467_v11 = vpop.eup %3466 }
0x1491   :  { %v1335_v14 = vmul.f32 %v3467_v11, %v1242_v2 }
0x14f4   :  { %v1338_v12 = vpop.permute.xlu1 %1337 }
0x14f5   :  { %v1340_v13 = vmul.f32 %v3467_v11, %v1338_v12 }
0x14f7   :  { %1342 = vrot.lane.b32.xlu0 %v1340_v13, %s3780_s28 }
0x1569   :  { %v1343_v16 = vpop.permute.xlu0 %1342 }
0x156a   :  { %v4286_v17 = vadd.f32 %v1343_v16, %v1335_v14 }
0x156c   :  { %3468 = vtanh.f32 %v4286_v17 }
0x1576   :  { %v3469_v18 = vpop.eup %3468 }
0x1577   :  { %1348 = vrot.lane.b32.xlu1 %v3469_v18, %s3782_s23 }
0x15e9   :  { %v1349_v23 = vpop.permute.xlu1 %1348 }
0x15ea   :  { %v1351_v26 = vmul.f32 %v3467_v11, %v1349_v23 }
0x15ec   :  { %1353 = vrot.lane.b32.xlu0 %v1351_v26, %s3780_s28 }
0x15f0   :  { %1711 = vrot.lane.b32.xlu0 %v1627_v27, %s3780_s28 }
0x165e   :  { %v1354_v28 = vpop.permute.xlu0 %1353 }
0x165f   :  { %1356 = vst.msk [vmem:[#allocation3 + $0x30] sm:$0xff] %vm343_vm3, %v1354_v28  ;;  %3122 = vmatmul.mubr.msk.f32.vlgmr.msra.gmra.mrb[18].mxu1 %vm343_vm3, %v1354_v28 }
0x1660   :  { %3322 = vmatpush3.bf16.msra.mxu1 %v4290_v21  ;;  %3152 = vmatprep.mubr.msk.f32.mxu1 %vm3781_vm10, %v3778_v9 }
0x1661   :  { %3323 = vmatprep.subr.bf16.mxu1 %v3779_v49 }
0x1662   :  { %v1712_v41 = vpop.permute.xlu0 %1711 }
0x1664   :  { %3325 = vmatpush3.bf16.msra.mxu1 %v4294_v25 }
0x1665   :  { %3326 = vmatprep.subr.bf16.mxu1 %v3779_v49 }
0x1666   :  { %v1472_v8 = vld [vmem:[#allocation3 + $0x30] sm:$0xff] }
0x1667   :  { %3153 = vmatmul.mubr.msk.f32.vlgmr.msra.gmra.mrb[20].mxu1 %vm343_vm3, %v1626_v29  ;;  %3141 = vmatprep.mubr.msk.f32.mxu0 %vm343_vm3, %v1472_v8 }
0x1668   :  { %3328 = vmatpush3.bf16.msra.mxu1 %v4290_v21  ;;  %3163 = vmatprep.mubr.msk.f32.mxu1 %vm3781_vm10, %v3778_v9 }
0x1669   :  { %3329 = vmatprep.subr.bf16.mxu1 %v3779_v49 }
0x166c   :  { %3331 = vmatpush3.bf16.msra.mxu1 %v4294_v25 }
0x166d   :  { %3338 = vmatprep.subr.bf16.mxu1 %v3779_v49 }
0x1732   :  { %v1426_v15 = vpop.f32.mrb[18].mxu1 }
0x1733   :  { %v1430_v48 = vadd.f32 %v1426_v15, %v614_v30  ;;  %v3123_v31 = vpop.f32.mrb[19].mxu1 }
0x1734   :  { %v1586_v31 = vadd.f32 %v4324_v32, %v4278_v36 }
0x1735   :  { %v2837_v50 = vmul.f32 -1.442695, %v1430_v48 }
0x173a   :  { %v1698_v34 = vpop.f32.mrb[20].mxu1 }
0x173b   :  { %v1702_v53 = vadd.f32 %v1698_v34, %v1576_v33  ;;  %v3154_v35 = vpop.f32.mrb[21].mxu1 }
0x173d   :  { %3470 = vtanh.f32 %v1702_v53  ;;  %v2848_v2 = vmul.f32 -1.442695, %v1702_v53 }
0x173f   :  { %3472 = vpow2.f32 %v2848_v2 }
0x1747   :  { %v3471_v37 = vpop.eup %3470 }
0x1748   :  { %1716 = vrot.lane.b32.xlu1 %v3471_v37, %s3782_s23 }
0x1749   :  { %v3473_v38 = vpop.eup %3472 }
0x174a   :  { %v1706_v39 = vadd.f32 1.0, %v3473_v38 }
0x174c   :  { %3474 = vrcp.f32 %v1706_v39 }
0x1756   :  { %v3475_v24 = vpop.eup %3474 }
0x1757   :  { %v1714_v42 = vmul.f32 %v3475_v24, %v1712_v41 }
0x17ba   :  { %v1717_v6 = vpop.permute.xlu1 %1716 }
0x17bb   :  { %v1719_v40 = vmul.f32 %v3475_v24, %v1717_v6 }
0x17bd   :  { %1721 = vrot.lane.b32.xlu1 %v1719_v40, %s3780_s28 }
0x182f   :  { %v1722_v43 = vpop.permute.xlu1 %1721 }
0x1830   :  { %v1724_v44 = vadd.f32 %v1722_v43, %v1714_v42 }
0x1832   :  { %3476 = vtanh.f32 %v1724_v44 }
0x1833   :  { %3478 = vtanh.f32 %v1430_v48 }
0x1834   :  { %3480 = vpow2.f32 %v2837_v50 }
0x183c   :  { %v3477_v46 = vpop.eup %3476 }
0x183d   :  { %1727 = vrot.lane.b32.xlu0 %v3477_v46, %s3782_s23  ;;  %v3479_v47 = vpop.eup %3478 }
0x183e   :  { %v3481_v45 = vpop.eup %3480 }
0x183f   :  { %v1434_v51 = vadd.f32 1.0, %v3481_v45 }
0x1841   :  { %1440 = vrot.lane.b32.xlu0 %v3479_v47, %s3782_s23  ;;  %3482 = vrcp.f32 %v1434_v51  ;;  %v1591_v47 = vadd.f32 %v4276_v0, %v4324_v32 }
0x184b   :  { %v3483_v56 = vpop.eup %3482 }
0x184c   :  { %v1438_v59 = vmul.f32 %v3483_v56, %v4286_v17 }
0x18af   :  { %v1728_v54 = vpop.permute.xlu0 %1727 }
0x18b0   :  { %v1730_v55 = vmul.f32 %v3475_v24, %v1728_v54 }
0x18b2   :  { %1732 = vrot.lane.b32.xlu1 %v1730_v55, %s3780_s28 }
0x18b3   :  { %v1441_v57 = vpop.permute.xlu0 %1440 }
0x18b4   :  { %v1443_v52 = vmul.f32 %v3483_v56, %v1441_v57 }
0x18b6   :  { %1445 = vrot.lane.b32.xlu0 %v1443_v52, %s3780_s28 }
0x1924   :  { %v1733_v58 = vpop.permute.xlu1 %1732 }
0x1925   :  { %1735 = vst.msk [vmem:[#allocation3] sm:$0xff] %vm343_vm3, %v1733_v58  ;;  %3164 = vmatmul.mubr.msk.f32.vlgmr.msra.gmra.mrb[22].mxu1 %vm343_vm3, %v1733_v58 }
0x1926   :  { %3340 = vmatpush3.bf16.msra.mxu1 %v4290_v21  ;;  %3185 = vmatprep.mubr.msk.f32.mxu1 %vm3781_vm10, %v3778_v9 }
0x1927   :  { %3341 = vmatprep.subr.bf16.mxu1 %v3779_v49 }
0x1928   :  { %v1446_v60 = vpop.permute.xlu0 %1445 }
0x1929   :  { %v4340_v63 = vadd.f32 %v1446_v60, %v1438_v59 }
0x192a   :  { %3343 = vmatpush3.bf16.msra.mxu1 %v4294_v25 }
0x192b   :  { %3484 = vtanh.f32 %v4340_v63  ;;  %3350 = vmatprep.subr.bf16.mxu1 %v3779_v49 }
0x1935   :  { %v3485_v62 = vpop.eup %3484 }
0x1936   :  { %1451 = vrot.lane.b32.xlu0 %v3485_v62, %s3782_s23 }
0x19a8   :  { %v1452_v5 = vpop.permute.xlu0 %1451 }
0x19a9   :  { %v1454_v7 = vmul.f32 %v3483_v56, %v1452_v5 }
0x19ab   :  { %1456 = vrot.lane.b32.xlu0 %v1454_v7, %s3780_s28 }
0x19f8   :  { %v1805_v11 = vpop.f32.mrb[22].mxu1 }
0x19f9   :  { %v1809_v12 = vadd.f32 %v1805_v11, %v1581_v10  ;;  %v3165_v13 = vpop.f32.mrb[23].mxu1 }
0x19fb   :  { %3486 = vtanh.f32 %v1809_v12  ;;  %v2850_v18 = vmul.f32 -1.442695, %v1809_v12  ;;  %v1596_v12 = vadd.f32 %v4324_v32, %v4283_v3 }
0x19fd   :  { %3488 = vpow2.f32 %v2850_v18 }
0x1a05   :  { %v3487_v14 = vpop.eup %3486 }
0x1a06   :  { %1819 = vrot.lane.b32.xlu1 %v3487_v14, %s3782_s23 }
0x1a07   :  { %v3489_v61 = vpop.eup %3488 }
0x1a08   :  { %v1813_v19 = vadd.f32 1.0, %v3489_v61 }
0x1a0a   :  { %3490 = vrcp.f32 %v1813_v19 }
0x1a14   :  { %v3491_v20 = vpop.eup %3490 }
0x1a15   :  { %v1817_v23 = vmul.f32 %v3491_v20, %v1724_v44 }
0x1a1d   :  { %v1457_v16 = vpop.permute.xlu0 %1456 }
0x1a1e   :  { %1459 = vst.msk [vmem:[#allocation3 + $0x38] sm:$0xff] %vm343_vm3, %v1457_v16  ;;  %1460 = vst.msk [vmem:[#allocation16] sm:$0xff] %vm343_vm3, %v1457_v16 }
0x1a25   :  { %v1473_v17 = vld [vmem:[#allocation3 + $0x38] sm:$0xff] }
0x1a26   :  { %3142 = vmatmul.mubr.msk.f32.gmra.mrb[18].mxu0 %vm343_vm3, %v1473_v17 }
0x1a27   :  { %3174 = vmatprep.mubr.msk.f32.mxu0 %vm3781_vm10, %v3778_v9 }
0x1a78   :  { %v1820_v22 = vpop.permute.xlu1 %1819 }
0x1a79   :  { %v1822_v4 = vmul.f32 %v3491_v20, %v1820_v22 }
0x1a7b   :  { %1824 = vrot.lane.b32.xlu1 %v1822_v4, %s3780_s28 }
0x1aed   :  { %v1825_v26 = vpop.permute.xlu1 %1824 }
0x1aee   :  { %v1827_v27 = vadd.f32 %v1825_v26, %v1817_v23 }
0x1af0   :  { %3492 = vtanh.f32 %v1827_v27 }
0x1af9   :  { %v4356_v28 = vpop.f32.mrb[18].mxu0 }
0x1afa   :  { %v3493_v29 = vpop.eup %3492  ;;  %v4358_v8 = vpop.f32.mrb[19].mxu0 }
0x1afb   :  { %1830 = vrot.lane.b32.xlu1 %v3493_v29, %s3782_s23 }
0x1b6d   :  { %v1831_v30 = vpop.permute.xlu1 %1830 }
0x1b6e   :  { %v1833_v15 = vmul.f32 %v3491_v20, %v1831_v30 }
0x1b70   :  { %1835 = vrot.lane.b32.xlu1 %v1833_v15, %s3780_s28 }
0x1be2   :  { %v1836_v48 = vpop.permute.xlu1 %1835 }
0x1be3   :  { %1838 = vst.msk [vmem:[#allocation3 + $0x8] sm:$0xff] %vm343_vm3, %v1836_v48  ;;  %3175 = vmatmul.mubr.msk.f32.vlgmr.msra.gmra.mrb[20].mxu0 %vm343_vm3, %v1836_v48  ;;  %v1601_v48 = vadd.f32 %v4281_v1, %v4324_v32 }
0x1be4   :  { %3346 = vmatpush3.bf16.msra.mxu0 %v4290_v21  ;;  %3196 = vmatprep.mubr.msk.f32.mxu0 %vm3781_vm10, %v3778_v9 }
0x1be5   :  { %3347 = vmatprep.subr.bf16.mxu0 %v3779_v49 }
0x1be8   :  { %3349 = vmatpush3.bf16.msra.mxu0 %v4294_v25 }
0x1be9   :  { %3356 = vmatprep.subr.bf16.mxu0 %v3779_v49 }
0x1cb6   :  { %v1908_v33 = vpop.f32.mrb[20].mxu0 }
0x1cb7   :  { %v1912_v34 = vadd.f32 %v1908_v33, %v1586_v31  ;;  %v3176_v53 = vpop.f32.mrb[21].mxu0 }
0x1cb9   :  { %3494 = vtanh.f32 %v1912_v34  ;;  %v2852_v37 = vmul.f32 -1.442695, %v1912_v34 }
0x1cbb   :  { %3496 = vpow2.f32 %v2852_v37 }
0x1cc3   :  { %v3495_v35 = vpop.eup %3494 }
0x1cc4   :  { %1922 = vrot.lane.b32.xlu0 %v3495_v35, %s3782_s23 }
0x1cc5   :  { %v3497_v2 = vpop.eup %3496 }
0x1cc6   :  { %v1916_v38 = vadd.f32 1.0, %v3497_v2 }
0x1cc8   :  { %3498 = vrcp.f32 %v1916_v38 }
0x1cd2   :  { %v3499_v39 = vpop.eup %3498 }
0x1cd3   :  { %v1920_v40 = vmul.f32 %v3499_v39, %v1827_v27 }
0x1d36   :  { %v1923_v24 = vpop.permute.xlu0 %1922 }
0x1d37   :  { %v1925_v6 = vmul.f32 %v3499_v39, %v1923_v24  ;;  %v2474_v24 = vld [vmem:[#allocation15 + $0x8] sm:$0xff] }
0x1d39   :  { %1927 = vrot.lane.b32.xlu1 %v1925_v6, %s3780_s28 }
0x1dab   :  { %v1928_v41 = vpop.permute.xlu1 %1927 }
0x1dac   :  { %v1930_v36 = vadd.f32 %v1928_v41, %v1920_v40 }
0x1dae   :  { %3500 = vtanh.f32 %v1930_v36 }
0x1db8   :  { %v3501_v42 = vpop.eup %3500 }
0x1db9   :  { %1933 = vrot.lane.b32.xlu0 %v3501_v42, %s3782_s23  ;;  %v2475_v42 = vld [vmem:[#allocation15 + $0x10] sm:$0xff] }
0x1e2b   :  { %v1934_v43 = vpop.permute.xlu0 %1933 }
0x1e2c   :  { %v1936_v44 = vmul.f32 %v3499_v39, %v1934_v43  ;;  %v2473_v39 = vld [vmem:[#allocation15] sm:$0xff]  ;;  %v2476_v43 = vld [vmem:[#allocation15 + $0x18] sm:$0xff] }
0x1e2d   :  { %v3368_v6 = vpack.c.bf16 %v2474_v24, %v2473_v39 }
0x1e2e   :  { %1938 = vrot.lane.b32.xlu1 %v1936_v44, %s3780_s28  ;;  %v3372_v44 = vpack.c.bf16 %v2476_v43, %v2475_v42 }
0x1ea0   :  { %v1939_v46 = vpop.permute.xlu1 %1938 }
0x1ea1   :  { %1941 = vst.msk [vmem:[#allocation3 + $0x10] sm:$0xff] %vm343_vm3, %v1939_v46  ;;  %3186 = vmatmul.mubr.msk.f32.vlgmr.msra.gmra.mrb[24].mxu1 %vm343_vm3, %v1939_v46 }
0x1ea2   :  { %3352 = vmatpush3.bf16.msra.mxu1 %v4290_v21  ;;  %3207 = vmatprep.mubr.msk.f32.mxu1 %vm3781_vm10, %v3778_v9 }
0x1ea3   :  { %3353 = vmatprep.subr.bf16.mxu1 %v3779_v49 }
0x1ea6   :  { %3355 = vmatpush3.bf16.msra.mxu1 %v4294_v25 }
0x1ea7   :  { %3362 = vmatprep.subr.bf16.mxu1 %v3779_v49 }
0x1f74   :  { %v2011_v50 = vpop.f32.mrb[24].mxu1 }
0x1f75   :  { %v2015_v45 = vadd.f32 %v2011_v50, %v1591_v47  ;;  %v3187_v51 = vpop.f32.mrb[25].mxu1  ;;  %v2465_v47 = vld [vmem:[#allocation3] sm:$0xff]  ;;  %v2466_v50 = vld [vmem:[#allocation3 + $0x8] sm:$0xff] }
0x1f77   :  { %3502 = vtanh.f32 %v2015_v45  ;;  %v2854_v55 = vmul.f32 -1.442695, %v2015_v45  ;;  %v2467_v45 = vld [vmem:[#allocation3 + $0x10] sm:$0xff] }
0x1f79   :  { %3504 = vpow2.f32 %v2854_v55 }
0x1f81   :  { %v3503_v54 = vpop.eup %3502 }
0x1f82   :  { %2025 = vrot.lane.b32.xlu0 %v3503_v54, %s3782_s23 }
0x1f83   :  { %v3505_v56 = vpop.eup %3504 }
0x1f84   :  { %v2019_v57 = vadd.f32 1.0, %v3505_v56  ;;  %v1606_v56 = vadd.f32 %v4324_v32, %v4358_v8 }
0x1f86   :  { %3506 = vrcp.f32 %v2019_v57 }
0x1f90   :  { %v3507_v52 = vpop.eup %3506 }
0x1f91   :  { %v2023_v60 = vmul.f32 %v3507_v52, %v1930_v36 }
0x1ff4   :  { %v2026_v58 = vpop.permute.xlu0 %2025 }
0x1ff5   :  { %v2028_v59 = vmul.f32 %v3507_v52, %v2026_v58 }
0x1ff7   :  { %2030 = vrot.lane.b32.xlu1 %v2028_v59, %s3780_s28 }
0x2069   :  { %v2031_v62 = vpop.permute.xlu1 %2030 }
0x206a   :  { %v2033_v0 = vadd.f32 %v2031_v62, %v2023_v60 }
0x206c   :  { %3508 = vtanh.f32 %v2033_v0 }
0x2076   :  { %v3509_v5 = vpop.eup %3508 }
0x2077   :  { %2036 = vrot.lane.b32.xlu0 %v3509_v5, %s3782_s23 }
0x20e9   :  { %v2037_v7 = vpop.permute.xlu0 %2036 }
0x20ea   :  { %v2039_v10 = vmul.f32 %v3507_v52, %v2037_v7 }
0x20ec   :  { %2041 = vrot.lane.b32.xlu1 %v2039_v10, %s3780_s28 }
0x215e   :  { %v2042_v11 = vpop.permute.xlu1 %2041 }
0x215f   :  { %2044 = vst.msk [vmem:[#allocation3 + $0x18] sm:$0xff] %vm343_vm3, %v2042_v11  ;;  %3197 = vmatmul.mubr.msk.f32.vlgmr.msra.gmra.mrb[22].mxu0 %vm343_vm3, %v2042_v11 }
0x2160   :  { %3358 = vmatpush3.bf16.msra.mxu0 %v4290_v21  ;;  %3218 = vmatprep.mubr.msk.f32.mxu0 %vm3781_vm10, %v3778_v9 }
0x2161   :  { %3359 = vmatprep.subr.bf16.mxu0 %v3779_v49 }
0x2164   :  { %3361 = vmatpush3.bf16.msra.mxu0 %v4294_v25 }
0x2165   :  { %3369 = vmatprep.subr.bf16.mxu0 %v3368_v6 }
0x2166   :  { %v2468_v51 = vld [vmem:[#allocation3 + $0x18] sm:$0xff] }
0x2232   :  { %v2114_v13 = vpop.f32.mrb[22].mxu0 }
0x2233   :  { %v2118_v14 = vadd.f32 %v2114_v13, %v1596_v12  ;;  %v3198_v16 = vpop.f32.mrb[23].mxu0 }
0x2235   :  { %3510 = vtanh.f32 %v2118_v14  ;;  %v2856_v18 = vmul.f32 -1.442695, %v2118_v14 }
0x2237   :  { %3512 = vpow2.f32 %v2856_v18 }
0x223f   :  { %v3511_v17 = vpop.eup %3510 }
0x2240   :  { %2128 = vrot.lane.b32.xlu0 %v3511_v17, %s3782_s23 }
0x2241   :  { %v3513_v61 = vpop.eup %3512 }
0x2242   :  { %v2122_v19 = vadd.f32 1.0, %v3513_v61 }
0x2244   :  { %3514 = vrcp.f32 %v2122_v19 }
0x224e   :  { %v3515_v20 = vpop.eup %3514 }
0x224f   :  { %v2126_v23 = vmul.f32 %v3515_v20, %v2033_v0 }
0x22b2   :  { %v2129_v22 = vpop.permute.xlu0 %2128 }
0x22b3   :  { %v2131_v4 = vmul.f32 %v3515_v20, %v2129_v22 }
0x22b5   :  { %2133 = vrot.lane.b32.xlu1 %v2131_v4, %s3780_s28 }
0x2327   :  { %v2134_v26 = vpop.permute.xlu1 %2133 }
0x2328   :  { %v2136_v3 = vadd.f32 %v2134_v26, %v2126_v23  ;;  %v1611_v26 = vadd.f32 %v4356_v28, %v4324_v32 }
0x232a   :  { %3516 = vtanh.f32 %v2136_v3 }
0x2334   :  { %v3517_v27 = vpop.eup %3516 }
0x2335   :  { %2139 = vrot.lane.b32.xlu0 %v3517_v27, %s3782_s23 }
0x23a7   :  { %v2140_v29 = vpop.permute.xlu0 %2139 }
0x23a8   :  { %v2142_v30 = vmul.f32 %v3515_v20, %v2140_v29 }
0x23aa   :  { %2144 = vrot.lane.b32.xlu1 %v2142_v30, %s3780_s28 }
0x241c   :  { %v2145_v15 = vpop.permute.xlu1 %2144 }
0x241d   :  { %2147 = vst.msk [vmem:[#allocation3 + $0x20] sm:$0xff] %vm343_vm3, %v2145_v15  ;;  %3208 = vmatmul.mubr.msk.f32.vlgmr.msra.gmra.mrb[26].mxu1 %vm343_vm3, %v2145_v15 }
0x241e   :  { %3364 = vmatpush3.bf16.msra.mxu1 %v4290_v21  ;;  %3229 = vmatprep.mubr.msk.f32.mxu1 %vm3781_vm10, %v3778_v9 }
0x241f   :  { %3365 = vmatprep.subr.bf16.mxu1 %v3779_v49 }
0x2422   :  { %3367 = vmatpush3.bf16.msra.mxu1 %v4294_v25 }
0x2424   :  { %v2469_v54 = vld [vmem:[#allocation3 + $0x20] sm:$0xff] }
0x24f0   :  { %v2217_v31 = vpop.f32.mrb[26].mxu1 }
0x24f1   :  { %v2221_v33 = vadd.f32 %v2217_v31, %v1601_v48  ;;  %v3209_v34 = vpop.f32.mrb[27].mxu1 }
0x24f3   :  { %3518 = vtanh.f32 %v2221_v33  ;;  %v2858_v35 = vmul.f32 -1.442695, %v2221_v33 }
0x24f5   :  { %3520 = vpow2.f32 %v2858_v35 }
0x24fd   :  { %v3519_v53 = vpop.eup %3518 }
0x24fe   :  { %2231 = vrot.lane.b32.xlu0 %v3519_v53, %s3782_s23 }
0x24ff   :  { %v3521_v21 = vpop.eup %3520 }
0x2500   :  { %v2225_v37 = vadd.f32 1.0, %v3521_v21 }
0x2502   :  { %3522 = vrcp.f32 %v2225_v37  ;;  %v2863_v37 = vld [vmem:[%s4617_s15] ss:$0 sm:$0xff] }
0x250c   :  { %v3523_v9 = vpop.eup %3522 }
0x250d   :  { %v2229_v25 = vmul.f32 %v3523_v9, %v2136_v3 }
0x2570   :  { %v2232_v2 = vpop.permute.xlu0 %2231 }
0x2571   :  { %v2234_v49 = vmul.f32 %v3523_v9, %v2232_v2 }
0x2573   :  { %2236 = vrot.lane.b32.xlu1 %v2234_v49, %s3780_s28 }
0x25e5   :  { %v2237_v38 = vpop.permute.xlu1 %2236 }
0x25e6   :  { %v2239_v1 = vadd.f32 %v2237_v38, %v2229_v25 }
0x25e8   :  { %3524 = vtanh.f32 %v2239_v1 }
0x25f2   :  { %v3525_v40 = vpop.eup %3524 }
0x25f3   :  { %2242 = vrot.lane.b32.xlu0 %v3525_v40, %s3782_s23 }
0x2665   :  { %v2243_v41 = vpop.permute.xlu0 %2242 }
0x2666   :  { %v2245_v36 = vmul.f32 %v3523_v9, %v2243_v41 }
0x2668   :  { %2247 = vrot.lane.b32.xlu1 %v2245_v36, %s3780_s28 }
0x26da   :  { %v2248_v46 = vpop.permute.xlu1 %2247 }
0x26db   :  { %2250 = vst.msk [vmem:[#allocation3 + $0x28] sm:$0xff] %vm343_vm3, %v2248_v46  ;;  %3219 = vmatmul.mubr.msk.f32.vlgmr.msra.gmra.mrb[24].mxu0 %vm343_vm3, %v2248_v46 }
0x26dc   :  { %3371 = vmatpush3.bf16.msra.mxu0 %v3368_v6  ;;  %3240 = vmatprep.mubr.msk.f32.mxu0 %vm343_vm3, %v2465_v47 }
0x26dd   :  { %3373 = vmatprep.subr.bf16.mxu0 %v3372_v44 }
0x26e0   :  { %3375 = vmatpush3.bf16.msra.mxu0 %v3372_v44 }
0x26e2   :  { %v2470_v55 = vld [vmem:[#allocation3 + $0x28] sm:$0xff] }
0x26e3   :  { %3241 = vmatmul.mubr.msk.f32.vlgmr.msra.gmra.mrb[26].mxu0 %vm343_vm3, %v2466_v50 }
0x26e4   :  { %3243 = vmatprep.mubr.msk.f32.mxu0 %vm343_vm3, %v2467_v45 }
0x26e7   :  { %3244 = vmatmul.mubr.msk.f32.gmra.mrb[28].mxu0 %vm343_vm3, %v2468_v51 }
0x26e8   :  { %3246 = vmatprep.mubr.msk.f32.mxu0 %vm343_vm3, %v2469_v54 }
0x26eb   :  { %3247 = vmatmul.mubr.msk.f32.gmra.mrb[30].mxu0 %vm343_vm3, %v2470_v55 }
0x27ae   :  { %v2320_v57 = vpop.f32.mrb[24].mxu0 }
0x27af   :  { %v2324_v52 = vadd.f32 %v2320_v57, %v1606_v56  ;;  %v3220_v58 = vpop.f32.mrb[25].mxu0 }
0x27b1   :  { %3526 = vtanh.f32 %v2324_v52  ;;  %v2860_v11 = vmul.f32 -1.442695, %v2324_v52 }
0x27b3   :  { %3528 = vpow2.f32 %v2860_v11 }
0x27b6   :  { %v4426_v59 = vpop.f32.mrb[26].mxu0 }
0x27b7   :  { %v2574_v60 = vpop.f32.mrb[27].mxu0  ;;  %v2580_v41 = vadd.f32 %v4426_v59, %v2863_v37 }
0x27b8   :  { %v2575_v9 = vadd.f32 %v2863_v37, %v2574_v60 }
0x27b9   :  { %v2618_v42 = vsel %vm343_vm3, %v2580_v41, 0.0 }
0x27ba   :  { %v3245_v62 = vpop.f32.mrb[28].mxu0  ;;  %v2615_v49 = vsel %vm343_vm3, %v2575_v9, 0.0 }
0x27bb   :  { %v3527_v0 = vpop.eup %3526  ;;  %v2584_v5 = vpop.f32.mrb[29].mxu0  ;;  %v2590_v25 = vadd.f32 %v3245_v62, %v2863_v37 }
0x27bc   :  { %2334 = vrot.lane.b32.xlu0 %v3527_v0, %s3782_s23  ;;  %v2585_v2 = vadd.f32 %v2863_v37, %v2584_v5 }
0x27bd   :  { %v3529_v12 = vpop.eup %3528  ;;  %v2624_v39 = vsel %vm343_vm3, %v2590_v25, 0.0 }
0x27be   :  { %v3248_v7 = vpop.f32.mrb[30].mxu0  ;;  %v2328_v13 = vadd.f32 1.0, %v3529_v12  ;;  %v2621_v38 = vsel %vm343_vm3, %v2585_v2, 0.0 }
0x27bf   :  { %v4429_v10 = vpop.f32.mrb[31].mxu0 }
0x27c0   :  { %3530 = vrcp.f32 %v2328_v13  ;;  %v2595_v36 = vadd.f32 %v2863_v37, %v4429_v10 }
0x27c2   :  { %v2627_v43 = vsel %vm343_vm3, %v2595_v36, 0.0 }
0x27ca   :  { %v3531_v8 = vpop.eup %3530 }
0x27cb   :  { %v2332_v17 = vmul.f32 %v3531_v8, %v2239_v1  ;;  %v2600_v1 = vadd.f32 %v3248_v7, %v2863_v37 }
0x27cd   :  { %v2630_v24 = vsel %vm343_vm3, %v2600_v1, 0.0 }
0x282e   :  { %v2335_v14 = vpop.permute.xlu0 %2334 }
0x282f   :  { %v2337_v16 = vmul.f32 %v3531_v8, %v2335_v14 }
0x2831   :  { %2339 = vrot.lane.b32.xlu1 %v2337_v16, %s3780_s28 }
0x28a3   :  { %v2340_v18 = vpop.permute.xlu1 %2339 }
0x28a4   :  { %v2342_v61 = vadd.f32 %v2340_v18, %v2332_v17 }
0x28a6   :  { %3532 = vtanh.f32 %v2342_v61 }
0x28b0   :  { %v3533_v19 = vpop.eup %3532 }
0x28b1   :  { %2345 = vrot.lane.b32.xlu0 %v3533_v19, %s3782_s23 }
0x2923   :  { %v2346_v20 = vpop.permute.xlu0 %2345 }
0x2924   :  { %v2348_v22 = vmul.f32 %v3531_v8, %v2346_v20 }
0x2926   :  { %2350 = vrot.lane.b32.xlu1 %v2348_v22, %s3780_s28 }
0x2998   :  { %v2351_v4 = vpop.permute.xlu1 %2350 }
0x2999   :  { %2353 = vst.msk [vmem:[#allocation3 + $0x30] sm:$0xff] %vm343_vm3, %v2351_v4  ;;  %3230 = vmatmul.mubr.msk.f32.vlgmr.msra.gmra.mrb[28].mxu1 %vm343_vm3, %v2351_v4 }
0x29a0   :  { %v2471_v23 = vld [vmem:[#allocation3 + $0x30] sm:$0xff] }
0x29a1   :  { %3249 = vmatprep.mubr.msk.f32.mxu0 %vm343_vm3, %v2471_v23 }
0x2a6c   :  { %v2423_v3 = vpop.f32.mrb[28].mxu1 }
0x2a6d   :  { %v2427_v27 = vadd.f32 %v2423_v3, %v1611_v26  ;;  %v3231_v29 = vpop.f32.mrb[29].mxu1 }
0x2a6f   :  { %3534 = vtanh.f32 %v2427_v27  ;;  %v2862_v15 = vmul.f32 -1.442695, %v2427_v27 }
0x2a71   :  { %3536 = vpow2.f32 %v2862_v15 }
0x2a79   :  { %v3535_v30 = vpop.eup %3534 }
0x2a7a   :  { %2437 = vrot.lane.b32.xlu0 %v3535_v30, %s3782_s23 }
0x2a7b   :  { %v3537_v48 = vpop.eup %3536 }
0x2a7c   :  { %v2431_v31 = vadd.f32 1.0, %v3537_v48 }
0x2a7e   :  { %3538 = vrcp.f32 %v2431_v31 }
0x2a88   :  { %v3539_v33 = vpop.eup %3538 }
0x2a89   :  { %v2435_v35 = vmul.f32 %v3539_v33, %v2342_v61 }
0x2aec   :  { %v2438_v34 = vpop.permute.xlu0 %2437 }
0x2aed   :  { %v2440_v53 = vmul.f32 %v3539_v33, %v2438_v34 }
0x2aef   :  { %2442 = vrot.lane.b32.xlu1 %v2440_v53, %s3780_s28 }
0x2b61   :  { %v2443_v21 = vpop.permute.xlu1 %2442 }
0x2b62   :  { %v4441_v32 = vadd.f32 %v2443_v21, %v2435_v35 }
0x2b64   :  { %3540 = vtanh.f32 %v4441_v32 }
0x2b6e   :  { %v3541_v28 = vpop.eup %3540 }
0x2b6f   :  { %2448 = vrot.lane.b32.xlu0 %v3541_v28, %s3782_s23 }
0x2b8e   :  { %2616 = vadd.xlane.f32.xlu0 %v2615_v49 }
0x2b92   :  { %2622 = vadd.xlane.f32.xlu0 %v2621_v38 }
0x2b96   :  { %2625 = vadd.xlane.f32.xlu0 %v2624_v39 }
0x2b9a   :  { %2631 = vadd.xlane.f32.xlu0 %v2630_v24 }
0x2be1   :  { %v2449_v6 = vpop.permute.xlu0 %2448 }
0x2be2   :  { %v2451_v40 = vmul.f32 %v3539_v33, %v2449_v6 }
0x2be4   :  { %2453 = vrot.lane.b32.xlu1 %v2451_v40, %s3780_s28 }
0x2c08   :  { %2619 = vadd.xlane.f32.xlu1 %v2618_v42 }
0x2c0c   :  { %2628 = vadd.xlane.f32.xlu1 %v2627_v43 }
0x2c1b   :  { %v2617_v47 = vpop.xlane.xlu0 %2616 }
0x2c1c   :  { %v2639_v55 = vmul.f32 0.03125, %v2617_v47 }
0x2c1e   :  { %v4462_v52 = vsub.f32 %v2575_v9, %v2639_v55 }
0x2c1f   :  { %v2623_v50 = vpop.xlane.xlu0 %2622 }
0x2c20   :  { %v2641_v58 = vmul.f32 0.03125, %v2623_v50  ;;  %v2655_v17 = vmul.f32 %v4462_v52, %v4462_v52 }
0x2c22   :  { %v4469_v8 = vsub.f32 %v2585_v2, %v2641_v58  ;;  %v2663_v22 = vsel %vm343_vm3, %v2655_v17, 0.0 }
0x2c23   :  { %v2626_v51 = vpop.xlane.xlu0 %2625 }
0x2c24   :  { %v2642_v56 = vmul.f32 0.03125, %v2626_v51  ;;  %v2657_v4 = vmul.f32 %v4469_v8, %v4469_v8  ;;  %v4505_v51 = vld [vmem:[%s4618_s16] ss:$0 sm:$0xff] }
0x2c26   :  { %v4464_v10 = vsub.f32 %v2590_v25, %v2642_v56  ;;  %v2669_v3 = vsel %vm343_vm3, %v2657_v4, 0.0  ;;  %v4511_v56 = vld [vmem:[%s4619_s17] ss:$0 sm:$0xff] }
0x2c27   :  { %v2632_v59 = vpop.xlane.xlu0 %2631 }
0x2c28   :  { %v2644_v11 = vmul.f32 0.03125, %v2632_v59  ;;  %v2658_v19 = vmul.f32 %v4464_v10, %v4464_v10 }
0x2c2a   :  { %v4474_v18 = vsub.f32 %v2600_v1, %v2644_v11  ;;  %v2672_v23 = vsel %vm343_vm3, %v2658_v19, 0.0 }
0x2c2c   :  { %v2660_v26 = vmul.f32 %v4474_v18, %v4474_v18 }
0x2c2e   :  { %v2678_v29 = vsel %vm343_vm3, %v2660_v26, 0.0 }
0x2c56   :  { %v2454_v44 = vpop.permute.xlu1 %2453 }
0x2c57   :  { %2456 = vst.msk [vmem:[#allocation3 + $0x38] sm:$0xff] %vm343_vm3, %v2454_v44  ;;  %2458 = vst.msk [vmem:[#allocation16 + $0x8] sm:$0xff] %vm343_vm3, %v2454_v44 }
0x2c5e   :  { %v2472_v46 = vld [vmem:[#allocation3 + $0x38] sm:$0xff] }
0x2c5f   :  { %3250 = vmatmul.mubr.msk.f32.gmra.mrb[32].mxu0 %vm343_vm3, %v2472_v46 }
0x2c95   :  { %v2620_v45 = vpop.xlane.xlu1 %2619 }
0x2c96   :  { %v2640_v54 = vmul.f32 0.03125, %v2620_v45 }
0x2c98   :  { %v4460_v57 = vsub.f32 %v2580_v41, %v2640_v54 }
0x2c99   :  { %v2629_v62 = vpop.xlane.xlu1 %2628 }
0x2c9a   :  { %v2656_v13 = vmul.f32 %v4460_v57, %v4460_v57  ;;  %v2643_v14 = vmul.f32 0.03125, %v2629_v62 }
0x2c9c   :  { %v2666_v61 = vsel %vm343_vm3, %v2656_v13, 0.0  ;;  %v4479_v20 = vsub.f32 %v2595_v36, %v2643_v14 }
0x2c9e   :  { %v2659_v27 = vmul.f32 %v4479_v20, %v4479_v20 }
0x2ca0   :  { %v2675_v30 = vsel %vm343_vm3, %v2659_v27, 0.0 }
0x2d32   :  { %v3251_v60 = vpop.f32.mrb[32].mxu0 }
0x2d33   :  { %v2610_v0 = vadd.f32 %v3251_v60, %v2863_v37  ;;  %v2604_v5 = vpop.f32.mrb[33].mxu0 }
0x2d34   :  { %v2605_v7 = vadd.f32 %v2863_v37, %v2604_v5 }
0x2d35   :  { %v2636_v12 = vsel %vm343_vm3, %v2610_v0, 0.0 }
0x2d36   :  { %2637 = vadd.xlane.f32.xlu0 %v2636_v12  ;;  %v2633_v16 = vsel %vm343_vm3, %v2605_v7, 0.0 }
0x2d37   :  { %2634 = vadd.xlane.f32.xlu1 %v2633_v16 }
0x2d3a   :  { %2667 = vadd.xlane.f32.xlu0 %v2666_v61 }
0x2d3b   :  { %2664 = vadd.xlane.f32.xlu1 %v2663_v22 }
0x2d3e   :  { %2673 = vadd.xlane.f32.xlu0 %v2672_v23 }
0x2d3f   :  { %2670 = vadd.xlane.f32.xlu1 %v2669_v3 }
0x2d42   :  { %2679 = vadd.xlane.f32.xlu0 %v2678_v29 }
0x2d43   :  { %2676 = vadd.xlane.f32.xlu1 %v2675_v30 }
0x2dc3   :  { %v2638_v15 = vpop.xlane.xlu0 %2637 }
0x2dc4   :  { %v2646_v48 = vmul.f32 0.03125, %v2638_v15  ;;  %v2635_v31 = vpop.xlane.xlu1 %2634 }
0x2dc5   :  { %v2645_v33 = vmul.f32 0.03125, %v2635_v31 }
0x2dc6   :  { %v4492_v34 = vsub.f32 %v2610_v0, %v2646_v48 }
0x2dc7   :  { %v4494_v53 = vsub.f32 %v2605_v7, %v2645_v33  ;;  %v2668_v35 = vpop.xlane.xlu0 %2667 }
0x2dc8   :  { %v2688_v21 = vmul.f32 0.03125, %v2668_v35  ;;  %v2665_v28 = vpop.xlane.xlu1 %2664  ;;  %v2662_v37 = vmul.f32 %v4492_v34, %v4492_v34 }
0x2dc9   :  { %v2687_v9 = vmul.f32 0.03125, %v2665_v28  ;;  %v2661_v2 = vmul.f32 %v4494_v53, %v4494_v53 }
0x2dca   :  { %v2696_v49 = vadd.f32 1e-05, %v2688_v21  ;;  %v2684_v25 = vsel %vm343_vm3, %v2662_v37, 0.0 }
0x2dcb   :  { %v2695_v38 = vadd.f32 1e-05, %v2687_v9  ;;  %2685 = vadd.xlane.f32.xlu0 %v2684_v25  ;;  %v2674_v1 = vpop.xlane.xlu0 %2673  ;;  %v2681_v39 = vsel %vm343_vm3, %v2661_v2, 0.0 }
0x2dcc   :  { %3542 = vrsqrt.f32 %v2696_v49  ;;  %v2690_v24 = vmul.f32 0.03125, %v2674_v1  ;;  %2682 = vadd.xlane.f32.xlu1 %v2681_v39  ;;  %v2671_v6 = vpop.xlane.xlu1 %2670 }
0x2dcd   :  { %3544 = vrsqrt.f32 %v2695_v38  ;;  %v2689_v40 = vmul.f32 0.03125, %v2671_v6 }
0x2dce   :  { %v2698_v41 = vadd.f32 1e-05, %v2690_v24 }
0x2dcf   :  { %v2697_v36 = vadd.f32 1e-05, %v2689_v40  ;;  %v2680_v42 = vpop.xlane.xlu0 %2679 }
0x2dd0   :  { %3546 = vrsqrt.f32 %v2698_v41  ;;  %v2692_v43 = vmul.f32 0.03125, %v2680_v42  ;;  %v2677_v44 = vpop.xlane.xlu1 %2676 }
0x2dd1   :  { %3548 = vrsqrt.f32 %v2697_v36  ;;  %v2691_v46 = vmul.f32 0.03125, %v2677_v44 }
0x2dd2   :  { %v2700_v47 = vadd.f32 1e-05, %v2692_v43 }
0x2dd3   :  { %v2699_v50 = vadd.f32 1e-05, %v2691_v46 }
0x2dd4   :  { %3550 = vrsqrt.f32 %v2700_v47 }
0x2dd5   :  { %3552 = vrsqrt.f32 %v2699_v50 }
0x2dd6   :  { %v3543_v45 = vpop.eup %3542 }
0x2dd7   :  { %v3545_v54 = vpop.eup %3544  ;;  %v2712_v55 = vmul.f32 %v3543_v45, %v4460_v57 }
0x2dd8   :  { %v2711_v58 = vmul.f32 %v3545_v54, %v4462_v52 }
0x2dd9   :  { %v2726_v59 = vmul.f32 %v4505_v51, %v2712_v55 }
0x2dda   :  { %v3547_v60 = vpop.eup %3546  ;;  %v2725_v62 = vmul.f32 %v4505_v51, %v2711_v58 }
0x2ddb   :  { %v3549_v0 = vpop.eup %3548  ;;  %v2740_v5 = vadd.f32 %v4511_v56, %v2726_v59  ;;  %v2714_v7 = vmul.f32 %v3547_v60, %v4464_v10 }
0x2ddc   :  { %v2739_v11 = vadd.f32 %v4511_v56, %v2725_v62  ;;  %v2713_v57 = vmul.f32 %v3549_v0, %v4469_v8 }
0x2ddd   :  { %2748 = vst.msk [vmem:[%s4620_s18 + $0x8] sm:$0xff] %vm343_vm3, %v2740_v5  ;;  %v2728_v52 = vmul.f32 %v4505_v51, %v2714_v7  ;;  %1462 = vrot.lane.b32.xlu1 %v4340_v63, %s3783_s22 }
0x2dde   :  { %v3551_v12 = vpop.eup %3550  ;;  %2747 = vst.msk [vmem:[%s4620_s18] sm:$0xff] %vm343_vm3, %v2739_v11  ;;  %v2727_v10 = vmul.f32 %v4505_v51, %v2713_v57 }
0x2ddf   :  { %v3553_v13 = vpop.eup %3552  ;;  %v2742_v8 = vadd.f32 %v4511_v56, %v2728_v52  ;;  %v2716_v14 = vmul.f32 %v3551_v12, %v4474_v18 }
0x2de0   :  { %v2741_v16 = vadd.f32 %v4511_v56, %v2727_v10  ;;  %v2715_v17 = vmul.f32 %v3553_v13, %v4479_v20 }
0x2de1   :  { %2750 = vst.msk [vmem:[%s4620_s18 + $0x18] sm:$0xff] %vm343_vm3, %v2742_v8  ;;  %v2730_v63 = vmul.f32 %v4505_v51, %v2716_v14  ;;  %2460 = vrot.lane.b32.xlu0 %v4441_v32, %s3783_s22 }
0x2de2   :  { %2749 = vst.msk [vmem:[%s4620_s18 + $0x10] sm:$0xff] %vm343_vm3, %v2741_v16  ;;  %v2729_v18 = vmul.f32 %v4505_v51, %v2715_v17 }
0x2de3   :  { %v2744_v61 = vadd.f32 %v4511_v56, %v2730_v63 }
0x2de4   :  { %v2743_v19 = vadd.f32 %v4511_v56, %v2729_v18 }
0x2de5   :  { %2752 = vst.msk [vmem:[%s4620_s18 + $0x28] sm:$0xff] %vm343_vm3, %v2744_v61 }
0x2de6   :  { %2751 = vst.msk [vmem:[%s4620_s18 + $0x20] sm:$0xff] %vm343_vm3, %v2743_v19 }
0x2de7   :  { %3723 = shalt.err (!%p3720_p4)
}
0x2de8   :  { %s3724_s11 = scalar_lea.hbm %s4621_s19, 256 }
0x2de9   :  { %p3725_p5 = scmp.ne.s32.totalorder %s4621_s19, %s3724_s11  ;;  %p3728_p6 = scmp.lt.u32.totalorder %s3724_s11, %s4621_s19 }
0x2deb   :  { %p3730_p7 = pnand %p3728_p6, %p3725_p5 }
0x2ded   :  { %3733 = shalt.err (!%p3730_p7)
}
0x2dee   :  { %2768 = dma.vmem_to_hbm [thread:$0]  %s2763_s0, 256, %s4621_s19, [#allocation6], %s3772_s24, %s3772_s24, %s3773_s27  }
0x2def   :  { %s3785_s6 = smov [#allocation17]  }
0x2df0   :  { %s2774_s16 = sshll.u32 %s3785_s6, 4  ;;  %s2775_s16 = int_to_ptr.vmem [resolvable:$true] %s2774_s16 }
0x2df1   :  { %s3734_s17 = scalar_lea.vmem %s2775_s16, 256  ;;  %p3739_p9 = scmp.lt.s32.totalorder %s2775_s16, %s2775_s16 }
0x2df2   :  { %p3735_p8 = scmp.ne.s32.totalorder %s2775_s16, %s3734_s17  ;;  %p3740_p10 = scmp.lt.s32.totalorder %s3734_s17, %s3734_s17 }
0x2df4   :  { %p3741_p11 = por %p3740_p10, %p3739_p9 }
0x2df6   :  { %p3742_p12 = pnand %p3741_p11, %p3735_p8 }
0x2e58   :  { %v2686_v32 = vpop.xlane.xlu0 %2685 }
0x2e59   :  { %v2694_v20 = vmul.f32 0.03125, %v2686_v32  ;;  %v2683_v22 = vpop.xlane.xlu1 %2682 }
0x2e5a   :  { %v2693_v4 = vmul.f32 0.03125, %v2683_v22 }
0x2e5b   :  { %v2702_v23 = vadd.f32 1e-05, %v2694_v20 }
0x2e5c   :  { %v2701_v26 = vadd.f32 1e-05, %v2693_v4  ;;  %v2461_v3 = vpop.permute.xlu0 %2460 }
0x2e5d   :  { %3554 = vrsqrt.f32 %v2702_v23  ;;  %2464 = vst.msk [vmem:[#allocation17 + $0x8] sm:$0xff] %vm343_vm3, %v2461_v3  ;;  %v1463_v27 = vpop.permute.xlu1 %1462 }
0x2e5e   :  { %3556 = vrsqrt.f32 %v2701_v26  ;;  %1465 = vst.msk [vmem:[#allocation17] sm:$0xff] %vm343_vm3, %v1463_v27 }
0x2e5f   :  { %3745 = shalt.err (!%p3742_p12)
}
0x2e60   :  { %s3746_s10 = scalar_lea.hbm %s4622_s20, 256 }
0x2e61   :  { %p3747_p13 = scmp.ne.s32.totalorder %s4622_s20, %s3746_s10  ;;  %p3750_p0 = scmp.lt.u32.totalorder %s3746_s10, %s4622_s20 }
0x2e63   :  { %p3752_p1 = pnand %p3750_p0, %p3747_p13 }
0x2e65   :  { %3755 = shalt.err (!%p3752_p1)
}
0x2e66   :  { %2780 = dma.vmem_to_hbm [thread:$0]  %s2775_s16, 256, %s4622_s20, [#allocation18], %s3772_s24, %s3772_s24, %s3773_s27  }
0x2e67   :  { %v3555_v29 = vpop.eup %3554 }
0x2e68   :  { %v3557_v30 = vpop.eup %3556  ;;  %v2718_v15 = vmul.f32 %v3555_v29, %v4492_v34 }
0x2e69   :  { %v2717_v48 = vmul.f32 %v3557_v30, %v4494_v53 }
0x2e6a   :  { %v2732_v31 = vmul.f32 %v4505_v51, %v2718_v15 }
0x2e6b   :  { %v2731_v33 = vmul.f32 %v4505_v51, %v2717_v48 }
0x2e6c   :  { %v2746_v35 = vadd.f32 %v4511_v56, %v2732_v31 }
0x2e6d   :  { %v2745_v21 = vadd.f32 %v4511_v56, %v2731_v33 }
0x2e6e   :  { %2754 = vst.msk [vmem:[%s4620_s18 + $0x38] sm:$0xff] %vm343_vm3, %v2746_v35 }
0x2e6f   :  { %2753 = vst.msk [vmem:[%s4620_s18 + $0x30] sm:$0xff] %vm343_vm3, %v2745_v21 }
0x2e70   :  { %3764 = dma.done.wait [#allocation6], 256  }
0x2e71   :  { %3765 = vsyncadd [#allocation6], 4294967040 }
0x2e72   :  { %3766 = dma.done.wait [#allocation18], 256  }
0x2e73   :  { %3767 = vsyncadd [#allocation18], 4294967040 }
0x2e74   :  { %2789 = vsyncpa [#allocation5], 1 }
0x2e75   :  { %2790 = vsyncpa [#allocation8], 1 }
0x2e76   :  { %2791 = vsyncpa [#allocation11], 1 }
0x2e77   :  { %2792 = vsyncpa [#allocation14], 1 }
0x2e78   :  { %2793 = vsyncpa [#allocation6], 1 }
0x2e79   :  { %2794 = vsyncpa [#allocation18], 1 }

</bundles_post_ra>
